<compile_context>
chip_gen: v7x
topology: tpu7x:2x2x1
jax: 0.10.0
libtpu: 0.0.40
codegen_flags: <defaults>
</compile_context>

<pallas_src>
import jax
import jax.numpy as jnp
from jax.experimental import pallas as pl
from jax.experimental.pallas import tpu as pltpu


# ----------------------------- Pallas kernel --------------------------------

def _make_rab_kernel(H, W, C, Bt, C8P):
    HW = H * W
    Lh = HW + 2 * W + 2          # per-image flat halo'd length
    inv_hw = 1.0 / float(HW)

    def kernel(x_ref, w1_ref, b1_ref, w2_ref, b2_ref,
               caw1t_ref, cab1_ref, caw2_ref, cab2_ref,
               paw1_ref, pab1_ref, paw2_ref, pab2_ref,
               mskl_ref, mskr_ref,
               o_ref, pT_ref, hbuf_ref):
        mskl = mskl_ref[...]                               # (1, HW) bf16
        mskr = mskr_ref[...]                               # (1, HW) bf16

        # ---- zero only the per-image halo borders (interior is always fully
        #      overwritten); tiny stores, safe under "parallel" semantics ----
        zhalo = jnp.zeros((C, W + 1), jnp.bfloat16)
        for bt in range(Bt):
            hbuf_ref[:, pl.ds(bt * Lh, W + 1)] = zhalo
            hbuf_ref[:, pl.ds(bt * Lh + W + 1 + HW, W + 1)] = zhalo

        # ---- stage x into the halo'd scratch: ONE f32->bf16 cast per image --
        for bt in range(Bt):
            hbuf_ref[:, pl.ds(bt * Lh + W + 1, HW)] = x_ref[bt].astype(jnp.bfloat16)

        def build_patches():
            # In-VMEM im2col: 9 shifted lane-slices per image from the halo'd
            # scratch.  Vertical out-of-range taps land in the zero halo;
            # horizontal row-wrap taps are zeroed by the column masks.
            for bt in range(Bt):
                base = bt * Lh + (W + 1)
                for k in range(9):
                    ky, kx = divmod(k, 3)
                    delta = (ky - 1) * W + (kx - 1)
                    sl = hbuf_ref[:, pl.ds(base + delta, HW)]
                    if kx == 0:
                        sl = sl * mskl
                    elif kx == 2:
                        sl = sl * mskr
                    pT_ref[pl.ds(k * C, C), pl.ds(bt * HW, HW)] = sl

        # ---- conv1 (bf16 MXU, BN1 scale pre-folded into weights) + bias+ReLU
        build_patches()
        y1 = jnp.dot(w1_ref[...], pT_ref[...],
                     preferred_element_type=jnp.float32)          # (C, Bt*HW)
        y1 = jnp.maximum(y1 + b1_ref[...], 0.0).astype(jnp.bfloat16)

        # ---- re-stage y1 (single bf16 store per image; halos still zero) ----
        for bt in range(Bt):
            hbuf_ref[:, pl.ds(bt * Lh + W + 1, HW)] = y1[:, bt * HW:(bt + 1) * HW]

        # ---- conv2 (bf16 MXU, BN2 scale pre-folded) + bias ----
        build_patches()
        y2 = jnp.dot(w2_ref[...], pT_ref[...],
                     preferred_element_type=jnp.float32) + b2_ref[...]

        # ---- per-image CALayer + PALayer + identity shortcut + final ReLU ---
        for bt in range(Bt):
            seg = y2[:, bt * HW:(bt + 1) * HW]                    # (C, HW) f32
            # CALayer: global avg pool + tiny MLP (VPU/XLU, no tiny matmuls)
            pooled = jnp.sum(seg, axis=1, keepdims=True) * inv_hw  # (C, 1)
            h = jnp.maximum(
                jnp.sum(caw1t_ref[...] * pooled, axis=0, keepdims=True)
                + cab1_ref[...], 0.0)                              # (1, C8P)
            ca_logit = (jnp.sum(caw2_ref[...] * h, axis=1, keepdims=True)
                        + cab2_ref[...])                           # (C, 1)
            ca = 1.0 / (1.0 + jnp.exp(-ca_logit))   # exact: gates whole channels
            seg = seg * ca
            # PALayer: per-pixel gate; first 1x1 layer in bf16 on the MXU
            h2 = jnp.dot(paw1_ref[...], seg.astype(jnp.bfloat16),
                         preferred_element_type=jnp.float32) + pab1_ref[...]
            h2 = jnp.maximum(h2, 0.0)                              # (C8P, HW)
            pa_logit = (jnp.sum(paw2_ref[...] * h2, axis=0, keepdims=True)
                        + pab2_ref[...])                           # (1, HW)
            pa = pl.reciprocal(1.0 + jnp.exp(-pa_logit), approx=True)
            seg = seg * pa
            # identity shortcut read right before the add (bounded live range)
            o_ref[bt] = jnp.maximum(seg + x_ref[bt], 0.0)

    return kernel


# ----------------------------- JAX glue --------------------------------------

def _bn_fold(gamma, beta, mean, var, eps=1e-5):
    s = gamma / jnp.sqrt(var + eps)
    return s, beta - mean * s


def _const_spec(shape):
    nd = len(shape)
    return pl.BlockSpec(shape, lambda g: (0,) * nd)


def residual_attention_block(x_nchw, p):
    """Forward pass of Residual_Attention_Block (stride=1, Cin == Cout)."""
    B, C, H, W = x_nchw.shape
    C8 = C // 8
    assert C % 8 == 0 and C8 >= 1, "CA/PA layers need channels divisible by 8"
    # TODO(synk): projection shortcut (stride != 1 or Cin != Cout) unsupported.
    assert p["w1"].shape[1] == C and p["w2"].shape[0] == C

    HW = H * W
    C8P = ((C8 + 7) // 8) * 8    # pad the squeeze dim to >= 8
    Lh = HW + 2 * W + 2          # halo'd per-image flat length

    # Batch elements per grid step: biggest divisor of B whose lane extent is
    # reasonable (amortizes the ~0.35us/step overhead; widens matmul N).
    Bt = 1
    for d in range(1, B + 1):
        if B % d == 0 and d * HW <= 4096:
            Bt = d
    G = B // Bt

    f32 = jnp.float32
    # Only host-side glue: a metadata reshape to the compact lane-dense layout.
    x = x_nchw.astype(f32).reshape(B, C, HW)

    s1, b1 = _bn_fold(p["bn1_g"], p["bn1_b"], p["bn1_m"], p["bn1_v"])
    s2, b2 = _bn_fold(p["bn2_g"], p["bn2_b"], p["bn2_m"], p["bn2_v"])

    def conv_w(w, s):
        # Fold the BN scale into the conv weights, then (Cout,Cin,3,3) ->
        # (Cout, 9*Cin) bf16 with column order (ky, kx, ci) matching pT rows.
        w = w * s[:, None, None, None]
        return jnp.transpose(w, (0, 2, 3, 1)).reshape(C, 9 * C).astype(jnp.bfloat16)

    w1t = conv_w(p["w1"], s1)
    w2t = conv_w(p["w2"], s2)
    b1 = b1.reshape(C, 1).astype(f32)
    b2 = b2.reshape(C, 1).astype(f32)

    pad8 = C8P - C8
    caw1t = jnp.pad(p["ca_w1"][:, :, 0, 0].T, ((0, 0), (0, pad8))).astype(f32)   # (C, C8P)
    cab1 = jnp.pad(p["ca_b1"].reshape(1, C8), ((0, 0), (0, pad8))).astype(f32)   # (1, C8P)
    caw2 = jnp.pad(p["ca_w2"][:, :, 0, 0], ((0, 0), (0, pad8))).astype(f32)      # (C, C8P)
    cab2 = p["ca_b2"].reshape(C, 1).astype(f32)                                  # (C, 1)
    paw1 = jnp.pad(p["pa_w1"][:, :, 0, 0], ((0, pad8), (0, 0))).astype(jnp.bfloat16)  # (C8P, C)
    pab1 = jnp.pad(p["pa_b1"].reshape(C8, 1), ((0, pad8), (0, 0))).astype(f32)   # (C8P, 1)
    paw2 = jnp.pad(p["pa_w2"][:, :, 0, 0].reshape(C8, 1),
                   ((0, pad8), (0, 0))).astype(f32)                              # (C8P, 1)
    pab2 = p["pa_b2"].reshape(1, 1).astype(f32)

    # Column masks for im2col: zero the taps that wrap across row boundaries.
    col = jnp.arange(HW) % W
    mskl = (col != 0).astype(jnp.bfloat16).reshape(1, HW)
    mskr = (col != W - 1).astype(jnp.bfloat16).reshape(1, HW)

    const_args = (w1t, b1, w2t, b2, caw1t, cab1, caw2, cab2,
                  paw1, pab1, paw2, pab2, mskl, mskr)

    out = pl.pallas_call(
        _make_rab_kernel(H, W, C, Bt, C8P),
        out_shape=jax.ShapeDtypeStruct((B, C, HW), f32),
        grid=(G,),
        in_specs=[pl.BlockSpec((Bt, C, HW), lambda g: (g, 0, 0))]
                 + [_const_spec(a.shape) for a in const_args],
        out_specs=pl.BlockSpec((Bt, C, HW), lambda g: (g, 0, 0)),
        scratch_shapes=[pltpu.VMEM((9 * C, Bt * HW), jnp.bfloat16),   # im2col P^T
                        pltpu.VMEM((C, Bt * Lh), jnp.bfloat16)],      # halo'd x / y1
        compiler_params=pltpu.CompilerParams(
            dimension_semantics=("parallel",)),
    )(x, *const_args)

    # Pure metadata reshape back to NCHW: no slice, no transpose, no HBM pass.
    return out.reshape(B, C, H, W)


# ----------------------------- reference (plain JAX, f32) --------------------

def _ref_forward(x, p):
    def conv3x3(inp, w):
        return jax.lax.conv_general_dilated(
            inp, w, window_strides=(1, 1), padding=((1, 1), (1, 1)),
            dimension_numbers=("NCHW", "OIHW", "NCHW"))

    def bn(inp, g, b, m, v, eps=1e-5):
        g, b, m, v = (t[None, :, None, None] for t in (g, b, m, v))
        return (inp - m) / jnp.sqrt(v + eps) * g + b

    x = x.astype(jnp.float32)
    y = jax.nn.relu(bn(conv3x3(x, p["w1"]),
                       p["bn1_g"], p["bn1_b"], p["bn1_m"], p["bn1_v"]))
    y = bn(conv3x3(y, p["w2"]),
           p["bn2_g"], p["bn2_b"], p["bn2_m"], p["bn2_v"])
    # CALayer
    pooled = jnp.mean(y, axis=(2, 3))                               # (B, C)
    h = jax.nn.relu(jnp.einsum("bc,dc->bd", pooled, p["ca_w1"][:, :, 0, 0])
                    + p["ca_b1"])
    ca = jax.nn.sigmoid(jnp.einsum("bd,cd->bc", h, p["ca_w2"][:, :, 0, 0])
                        + p["ca_b2"])
    y = y * ca[:, :, None, None]
    # PALayer
    h2 = jax.nn.relu(jnp.einsum("bchw,dc->bdhw", y, p["pa_w1"][:, :, 0, 0])
                     + p["pa_b1"][None, :, None, None])
    pa = jax.nn.sigmoid(jnp.einsum("bdhw,ed->behw", h2, p["pa_w2"][:, :, 0, 0])
                        + p["pa_b2"][None, :, None, None])
    y = y * pa
    return jax.nn.relu(y + x)                                       # identity shortcut


# ----------------------------- main -------------------------------------------

def _init_params(key, C):
    C8 = C // 8
    ks = jax.random.split(key, 16)
    n = lambda k, shape, s=0.1: s * jax.random.normal(k, shape, jnp.float32)
    u = lambda k, shape: jax.random.uniform(k, shape, jnp.float32, 0.5, 1.5)
    return {
        "w1": n(ks[0], (C, C, 3, 3)),
        "bn1_g": u(ks[1], (C,)), "bn1_b": n(ks[2], (C,)),
        "bn1_m": n(ks[3], (C,)), "bn1_v": u(ks[4], (C,)),
        "w2": n(ks[5], (C, C, 3, 3)),
        "bn2_g": u(ks[6], (C,)), "bn2_b": n(ks[7], (C,)),
        "bn2_m": n(ks[8], (C,)), "bn2_v": u(ks[9], (C,)),
        "ca_w1": n(ks[10], (C8, C, 1, 1)), "ca_b1": n(ks[11], (C8,)),
        "ca_w2": n(ks[12], (C, C8, 1, 1)), "ca_b2": n(ks[13], (C,)),
        "pa_w1": n(ks[14], (C8, C, 1, 1)), "pa_b1": jnp.zeros((C8,), jnp.float32),
        "pa_w2": n(ks[15], (1, C8, 1, 1)), "pa_b2": jnp.zeros((1,), jnp.float32),
    }


if __name__ == "__main__":
    B, C, H, W = 2, 16, 16, 16   # channels must be divisible by 8 (CA/PA layers)
    key = jax.random.PRNGKey(0)
    kx_, kp_ = jax.random.split(key)
    x = 0.5 * jax.random.normal(kx_, (B, C, H, W), jnp.float32)
    params = _init_params(kp_, C)

    out = jax.block_until_ready(residual_attention_block(x, params))
    assert out.shape == (B, C, H, W)

    ref = _ref_forward(x, params)
    max_err = float(jnp.max(jnp.abs(out - ref)))
    mean_err = float(jnp.mean(jnp.abs(out - ref)))
    # Tolerance is set by the intentional bf16 MXU inputs (weights, patches,
    # PA hidden), not by layout slack.
    if max_err > 5e-2 or mean_err > 5e-3:
        raise RuntimeError(
            f"mismatch vs reference: max abs err = {max_err}, mean = {mean_err}")

    print("KERNEL_OK")
</pallas_src>

<mosaic_0001>
module attributes {stable_mosaic.version = 11 : i64} {
  func.func @kernel(%arg0: i32, %arg1: memref<2x16x256xf32, #tpu.memory_space<vmem>>, %arg2: memref<16x144xbf16, #tpu.memory_space<vmem>>, %arg3: memref<16x1xf32, #tpu.memory_space<vmem>>, %arg4: memref<16x144xbf16, #tpu.memory_space<vmem>>, %arg5: memref<16x1xf32, #tpu.memory_space<vmem>>, %arg6: memref<16x8xf32, #tpu.memory_space<vmem>>, %arg7: memref<1x8xf32, #tpu.memory_space<vmem>>, %arg8: memref<16x8xf32, #tpu.memory_space<vmem>>, %arg9: memref<16x1xf32, #tpu.memory_space<vmem>>, %arg10: memref<8x16xbf16, #tpu.memory_space<vmem>>, %arg11: memref<8x1xf32, #tpu.memory_space<vmem>>, %arg12: memref<8x1xf32, #tpu.memory_space<vmem>>, %arg13: memref<1x1xf32, #tpu.memory_space<vmem>>, %arg14: memref<1x256xbf16, #tpu.memory_space<vmem>>, %arg15: memref<1x256xbf16, #tpu.memory_space<vmem>>, %arg16: memref<2x16x256xf32, #tpu.memory_space<vmem>>, %arg17: memref<144x512xbf16, #tpu.memory_space<vmem>>, %arg18: memref<16x580xbf16, #tpu.memory_space<vmem>>) attributes {dimension_semantics = [#tpu.dimension_semantics<parallel>], iteration_bounds = array<i64: 1>, scalar_prefetch = 0 : i64, scratch_operands = 2 : i64, tpu.core_type = #tpu.core_type<tc>, window_params = [{transform_indices = @transform_0, window_bounds = array<i64: 2, 16, 256>}, {pipeline_mode = #tpu.pipeline_mode<synchronous>, transform_indices = @transform_1, window_bounds = array<i64: 16, 144>}, {pipeline_mode = #tpu.pipeline_mode<synchronous>, transform_indices = @transform_2, window_bounds = array<i64: 16, 1>}, {pipeline_mode = #tpu.pipeline_mode<synchronous>, transform_indices = @transform_3, window_bounds = array<i64: 16, 144>}, {pipeline_mode = #tpu.pipeline_mode<synchronous>, transform_indices = @transform_4, window_bounds = array<i64: 16, 1>}, {pipeline_mode = #tpu.pipeline_mode<synchronous>, transform_indices = @transform_5, window_bounds = array<i64: 16, 8>}, {pipeline_mode = #tpu.pipeline_mode<synchronous>, transform_indices = @transform_6, window_bounds = array<i64: 1, 8>}, {pipeline_mode = #tpu.pipeline_mode<synchronous>, transform_indices = @transform_7, window_bounds = array<i64: 16, 8>}, {pipeline_mode = #tpu.pipeline_mode<synchronous>, transform_indices = @transform_8, window_bounds = array<i64: 16, 1>}, {pipeline_mode = #tpu.pipeline_mode<synchronous>, transform_indices = @transform_9, window_bounds = array<i64: 8, 16>}, {pipeline_mode = #tpu.pipeline_mode<synchronous>, transform_indices = @transform_10, window_bounds = array<i64: 8, 1>}, {pipeline_mode = #tpu.pipeline_mode<synchronous>, transform_indices = @transform_11, window_bounds = array<i64: 8, 1>}, {pipeline_mode = #tpu.pipeline_mode<synchronous>, transform_indices = @transform_12, window_bounds = array<i64: 1, 1>}, {pipeline_mode = #tpu.pipeline_mode<synchronous>, transform_indices = @transform_13, window_bounds = array<i64: 1, 256>}, {pipeline_mode = #tpu.pipeline_mode<synchronous>, transform_indices = @transform_14, window_bounds = array<i64: 1, 256>}, {transform_indices = @transform_15, window_bounds = array<i64: 2, 16, 256>}]} {
    %c0 = arith.constant 0 : index
    %c0_0 = arith.constant 0 : index
    %0 = vector.load %arg14[%c0, %c0_0] : memref<1x256xbf16, #tpu.memory_space<vmem>>, vector<1x256xbf16>
    %c0_1 = arith.constant 0 : index
    %c0_2 = arith.constant 0 : index
    %1 = vector.load %arg15[%c0_1, %c0_2] : memref<1x256xbf16, #tpu.memory_space<vmem>>, vector<1x256xbf16>
    %cst = arith.constant 0.000000e+00 : bf16
    %2 = vector.broadcast %cst : bf16 to vector<16x17xbf16>
    %c0_3 = arith.constant 0 : index
    %c0_4 = arith.constant 0 : index
    %3 = vector.load %arg18[%c0_3, %c0_4] : memref<16x580xbf16, #tpu.memory_space<vmem>>, vector<16x17xbf16>
    tpu.vector_store %arg18[%c0_3, %c0_4], %2 {strides = array<i32>} : memref<16x580xbf16, #tpu.memory_space<vmem>>, vector<16x17xbf16>,
    %c0_5 = arith.constant 0 : index
    %c273 = arith.constant 273 : index
    %4 = vector.load %arg18[%c0_5, %c273] : memref<16x580xbf16, #tpu.memory_space<vmem>>, vector<16x17xbf16>
    tpu.vector_store %arg18[%c0_5, %c273], %2 {strides = array<i32>} : memref<16x580xbf16, #tpu.memory_space<vmem>>, vector<16x17xbf16>,
    %c0_6 = arith.constant 0 : index
    %c290 = arith.constant 290 : index
    %5 = vector.load %arg18[%c0_6, %c290] : memref<16x580xbf16, #tpu.memory_space<vmem>>, vector<16x17xbf16>
    tpu.vector_store %arg18[%c0_6, %c290], %2 {strides = array<i32>} : memref<16x580xbf16, #tpu.memory_space<vmem>>, vector<16x17xbf16>,
    %c0_7 = arith.constant 0 : index
    %c563 = arith.constant 563 : index
    %6 = vector.load %arg18[%c0_7, %c563] : memref<16x580xbf16, #tpu.memory_space<vmem>>, vector<16x17xbf16>
    tpu.vector_store %arg18[%c0_7, %c563], %2 {strides = array<i32>} : memref<16x580xbf16, #tpu.memory_space<vmem>>, vector<16x17xbf16>,
    %c0_8 = arith.constant 0 : index
    %c0_9 = arith.constant 0 : index
    %c0_10 = arith.constant 0 : index
    %7 = vector.load %arg1[%c0_8, %c0_9, %c0_10] : memref<2x16x256xf32, #tpu.memory_space<vmem>>, vector<1x16x256xf32>
    %8 = vector.shape_cast %7 : vector<1x16x256xf32> to vector<16x256xf32>
    %9 = arith.truncf %8 : vector<16x256xf32> to vector<16x256xbf16>
    %c0_11 = arith.constant 0 : index
    %c17 = arith.constant 17 : index
    %10 = vector.load %arg18[%c0_11, %c17] : memref<16x580xbf16, #tpu.memory_space<vmem>>, vector<16x256xbf16>
    tpu.vector_store %arg18[%c0_11, %c17], %9 {strides = array<i32>} : memref<16x580xbf16, #tpu.memory_space<vmem>>, vector<16x256xbf16>,
    %c1 = arith.constant 1 : index
    %c0_12 = arith.constant 0 : index
    %c0_13 = arith.constant 0 : index
    %11 = vector.load %arg1[%c1, %c0_12, %c0_13] : memref<2x16x256xf32, #tpu.memory_space<vmem>>, vector<1x16x256xf32>
    %12 = vector.shape_cast %11 : vector<1x16x256xf32> to vector<16x256xf32>
    %13 = arith.truncf %12 : vector<16x256xf32> to vector<16x256xbf16>
    %c0_14 = arith.constant 0 : index
    %c307 = arith.constant 307 : index
    %14 = vector.load %arg18[%c0_14, %c307] : memref<16x580xbf16, #tpu.memory_space<vmem>>, vector<16x256xbf16>
    tpu.vector_store %arg18[%c0_14, %c307], %13 {strides = array<i32>} : memref<16x580xbf16, #tpu.memory_space<vmem>>, vector<16x256xbf16>,
    %c0_15 = arith.constant 0 : index
    %c0_16 = arith.constant 0 : index
    %15 = vector.load %arg18[%c0_15, %c0_16] : memref<16x580xbf16, #tpu.memory_space<vmem>>, vector<16x256xbf16>
    %16 = vector.broadcast %0 : vector<1x256xbf16> to vector<16x256xbf16>
    %17 = arith.mulf %15, %16 : vector<16x256xbf16>
    %c0_17 = arith.constant 0 : index
    %c0_18 = arith.constant 0 : index
    %18 = vector.load %arg17[%c0_17, %c0_18] : memref<144x512xbf16, #tpu.memory_space<vmem>>, vector<16x256xbf16>
    tpu.vector_store %arg17[%c0_17, %c0_18], %17 {strides = array<i32>} : memref<144x512xbf16, #tpu.memory_space<vmem>>, vector<16x256xbf16>,
    %c0_19 = arith.constant 0 : index
    %c1_20 = arith.constant 1 : index
    %19 = vector.load %arg18[%c0_19, %c1_20] : memref<16x580xbf16, #tpu.memory_space<vmem>>, vector<16x256xbf16>
    %c16 = arith.constant 16 : index
    %c0_21 = arith.constant 0 : index
    %20 = vector.load %arg17[%c16, %c0_21] : memref<144x512xbf16, #tpu.memory_space<vmem>>, vector<16x256xbf16>
    tpu.vector_store %arg17[%c16, %c0_21], %19 {strides = array<i32>} : memref<144x512xbf16, #tpu.memory_space<vmem>>, vector<16x256xbf16>,
    %c0_22 = arith.constant 0 : index
    %c2 = arith.constant 2 : index
    %21 = vector.load %arg18[%c0_22, %c2] : memref<16x580xbf16, #tpu.memory_space<vmem>>, vector<16x256xbf16>
    %22 = vector.broadcast %1 : vector<1x256xbf16> to vector<16x256xbf16>
    %23 = arith.mulf %21, %22 : vector<16x256xbf16>
    %c32 = arith.constant 32 : index
    %c0_23 = arith.constant 0 : index
    %24 = vector.load %arg17[%c32, %c0_23] : memref<144x512xbf16, #tpu.memory_space<vmem>>, vector<16x256xbf16>
    tpu.vector_store %arg17[%c32, %c0_23], %23 {strides = array<i32>} : memref<144x512xbf16, #tpu.memory_space<vmem>>, vector<16x256xbf16>,
    %c0_24 = arith.constant 0 : index
    %c16_25 = arith.constant 16 : index
    %25 = vector.load %arg18[%c0_24, %c16_25] : memref<16x580xbf16, #tpu.memory_space<vmem>>, vector<16x256xbf16>
    %26 = vector.broadcast %0 : vector<1x256xbf16> to vector<16x256xbf16>
    %27 = arith.mulf %25, %26 : vector<16x256xbf16>
    %c48 = arith.constant 48 : index
    %c0_26 = arith.constant 0 : index
    %28 = vector.load %arg17[%c48, %c0_26] : memref<144x512xbf16, #tpu.memory_space<vmem>>, vector<16x256xbf16>
    tpu.vector_store %arg17[%c48, %c0_26], %27 {strides = array<i32>} : memref<144x512xbf16, #tpu.memory_space<vmem>>, vector<16x256xbf16>,
    %c0_27 = arith.constant 0 : index
    %c17_28 = arith.constant 17 : index
    %29 = vector.load %arg18[%c0_27, %c17_28] : memref<16x580xbf16, #tpu.memory_space<vmem>>, vector<16x256xbf16>
    %c64 = arith.constant 64 : index
    %c0_29 = arith.constant 0 : index
    %30 = vector.load %arg17[%c64, %c0_29] : memref<144x512xbf16, #tpu.memory_space<vmem>>, vector<16x256xbf16>
    tpu.vector_store %arg17[%c64, %c0_29], %29 {strides = array<i32>} : memref<144x512xbf16, #tpu.memory_space<vmem>>, vector<16x256xbf16>,
    %c0_30 = arith.constant 0 : index
    %c18 = arith.constant 18 : index
    %31 = vector.load %arg18[%c0_30, %c18] : memref<16x580xbf16, #tpu.memory_space<vmem>>, vector<16x256xbf16>
    %32 = vector.broadcast %1 : vector<1x256xbf16> to vector<16x256xbf16>
    %33 = arith.mulf %31, %32 : vector<16x256xbf16>
    %c80 = arith.constant 80 : index
    %c0_31 = arith.constant 0 : index
    %34 = vector.load %arg17[%c80, %c0_31] : memref<144x512xbf16, #tpu.memory_space<vmem>>, vector<16x256xbf16>
    tpu.vector_store %arg17[%c80, %c0_31], %33 {strides = array<i32>} : memref<144x512xbf16, #tpu.memory_space<vmem>>, vector<16x256xbf16>,
    %c0_32 = arith.constant 0 : index
    %c32_33 = arith.constant 32 : index
    %35 = vector.load %arg18[%c0_32, %c32_33] : memref<16x580xbf16, #tpu.memory_space<vmem>>, vector<16x256xbf16>
    %36 = vector.broadcast %0 : vector<1x256xbf16> to vector<16x256xbf16>
    %37 = arith.mulf %35, %36 : vector<16x256xbf16>
    %c96 = arith.constant 96 : index
    %c0_34 = arith.constant 0 : index
    %38 = vector.load %arg17[%c96, %c0_34] : memref<144x512xbf16, #tpu.memory_space<vmem>>, vector<16x256xbf16>
    tpu.vector_store %arg17[%c96, %c0_34], %37 {strides = array<i32>} : memref<144x512xbf16, #tpu.memory_space<vmem>>, vector<16x256xbf16>,
    %c0_35 = arith.constant 0 : index
    %c33 = arith.constant 33 : index
    %39 = vector.load %arg18[%c0_35, %c33] : memref<16x580xbf16, #tpu.memory_space<vmem>>, vector<16x256xbf16>
    %c112 = arith.constant 112 : index
    %c0_36 = arith.constant 0 : index
    %40 = vector.load %arg17[%c112, %c0_36] : memref<144x512xbf16, #tpu.memory_space<vmem>>, vector<16x256xbf16>
    tpu.vector_store %arg17[%c112, %c0_36], %39 {strides = array<i32>} : memref<144x512xbf16, #tpu.memory_space<vmem>>, vector<16x256xbf16>,
    %c0_37 = arith.constant 0 : index
    %c34 = arith.constant 34 : index
    %41 = vector.load %arg18[%c0_37, %c34] : memref<16x580xbf16, #tpu.memory_space<vmem>>, vector<16x256xbf16>
    %42 = vector.broadcast %1 : vector<1x256xbf16> to vector<16x256xbf16>
    %43 = arith.mulf %41, %42 : vector<16x256xbf16>
    %c128 = arith.constant 128 : index
    %c0_38 = arith.constant 0 : index
    %44 = vector.load %arg17[%c128, %c0_38] : memref<144x512xbf16, #tpu.memory_space<vmem>>, vector<16x256xbf16>
    tpu.vector_store %arg17[%c128, %c0_38], %43 {strides = array<i32>} : memref<144x512xbf16, #tpu.memory_space<vmem>>, vector<16x256xbf16>,
    %c0_39 = arith.constant 0 : index
    %c290_40 = arith.constant 290 : index
    %45 = vector.load %arg18[%c0_39, %c290_40] : memref<16x580xbf16, #tpu.memory_space<vmem>>, vector<16x256xbf16>
    %46 = vector.broadcast %0 : vector<1x256xbf16> to vector<16x256xbf16>
    %47 = arith.mulf %45, %46 : vector<16x256xbf16>
    %c0_41 = arith.constant 0 : index
    %c256 = arith.constant 256 : index
    %48 = vector.load %arg17[%c0_41, %c256] : memref<144x512xbf16, #tpu.memory_space<vmem>>, vector<16x256xbf16>
    tpu.vector_store %arg17[%c0_41, %c256], %47 {strides = array<i32>} : memref<144x512xbf16, #tpu.memory_space<vmem>>, vector<16x256xbf16>,
    %c0_42 = arith.constant 0 : index
    %c291 = arith.constant 291 : index
    %49 = vector.load %arg18[%c0_42, %c291] : memref<16x580xbf16, #tpu.memory_space<vmem>>, vector<16x256xbf16>
    %c16_43 = arith.constant 16 : index
    %c256_44 = arith.constant 256 : index
    %50 = vector.load %arg17[%c16_43, %c256_44] : memref<144x512xbf16, #tpu.memory_space<vmem>>, vector<16x256xbf16>
    tpu.vector_store %arg17[%c16_43, %c256_44], %49 {strides = array<i32>} : memref<144x512xbf16, #tpu.memory_space<vmem>>, vector<16x256xbf16>,
    %c0_45 = arith.constant 0 : index
    %c292 = arith.constant 292 : index
    %51 = vector.load %arg18[%c0_45, %c292] : memref<16x580xbf16, #tpu.memory_space<vmem>>, vector<16x256xbf16>
    %52 = vector.broadcast %1 : vector<1x256xbf16> to vector<16x256xbf16>
    %53 = arith.mulf %51, %52 : vector<16x256xbf16>
    %c32_46 = arith.constant 32 : index
    %c256_47 = arith.constant 256 : index
    %54 = vector.load %arg17[%c32_46, %c256_47] : memref<144x512xbf16, #tpu.memory_space<vmem>>, vector<16x256xbf16>
    tpu.vector_store %arg17[%c32_46, %c256_47], %53 {strides = array<i32>} : memref<144x512xbf16, #tpu.memory_space<vmem>>, vector<16x256xbf16>,
    %c0_48 = arith.constant 0 : index
    %c306 = arith.constant 306 : index
    %55 = vector.load %arg18[%c0_48, %c306] : memref<16x580xbf16, #tpu.memory_space<vmem>>, vector<16x256xbf16>
    %56 = vector.broadcast %0 : vector<1x256xbf16> to vector<16x256xbf16>
    %57 = arith.mulf %55, %56 : vector<16x256xbf16>
    %c48_49 = arith.constant 48 : index
    %c256_50 = arith.constant 256 : index
    %58 = vector.load %arg17[%c48_49, %c256_50] : memref<144x512xbf16, #tpu.memory_space<vmem>>, vector<16x256xbf16>
    tpu.vector_store %arg17[%c48_49, %c256_50], %57 {strides = array<i32>} : memref<144x512xbf16, #tpu.memory_space<vmem>>, vector<16x256xbf16>,
    %c0_51 = arith.constant 0 : index
    %c307_52 = arith.constant 307 : index
    %59 = vector.load %arg18[%c0_51, %c307_52] : memref<16x580xbf16, #tpu.memory_space<vmem>>, vector<16x256xbf16>
    %c64_53 = arith.constant 64 : index
    %c256_54 = arith.constant 256 : index
    %60 = vector.load %arg17[%c64_53, %c256_54] : memref<144x512xbf16, #tpu.memory_space<vmem>>, vector<16x256xbf16>
    tpu.vector_store %arg17[%c64_53, %c256_54], %59 {strides = array<i32>} : memref<144x512xbf16, #tpu.memory_space<vmem>>, vector<16x256xbf16>,
    %c0_55 = arith.constant 0 : index
    %c308 = arith.constant 308 : index
    %61 = vector.load %arg18[%c0_55, %c308] : memref<16x580xbf16, #tpu.memory_space<vmem>>, vector<16x256xbf16>
    %62 = vector.broadcast %1 : vector<1x256xbf16> to vector<16x256xbf16>
    %63 = arith.mulf %61, %62 : vector<16x256xbf16>
    %c80_56 = arith.constant 80 : index
    %c256_57 = arith.constant 256 : index
    %64 = vector.load %arg17[%c80_56, %c256_57] : memref<144x512xbf16, #tpu.memory_space<vmem>>, vector<16x256xbf16>
    tpu.vector_store %arg17[%c80_56, %c256_57], %63 {strides = array<i32>} : memref<144x512xbf16, #tpu.memory_space<vmem>>, vector<16x256xbf16>,
    %c0_58 = arith.constant 0 : index
    %c322 = arith.constant 322 : index
    %65 = vector.load %arg18[%c0_58, %c322] : memref<16x580xbf16, #tpu.memory_space<vmem>>, vector<16x256xbf16>
    %66 = vector.broadcast %0 : vector<1x256xbf16> to vector<16x256xbf16>
    %67 = arith.mulf %65, %66 : vector<16x256xbf16>
    %c96_59 = arith.constant 96 : index
    %c256_60 = arith.constant 256 : index
    %68 = vector.load %arg17[%c96_59, %c256_60] : memref<144x512xbf16, #tpu.memory_space<vmem>>, vector<16x256xbf16>
    tpu.vector_store %arg17[%c96_59, %c256_60], %67 {strides = array<i32>} : memref<144x512xbf16, #tpu.memory_space<vmem>>, vector<16x256xbf16>,
    %c0_61 = arith.constant 0 : index
    %c323 = arith.constant 323 : index
    %69 = vector.load %arg18[%c0_61, %c323] : memref<16x580xbf16, #tpu.memory_space<vmem>>, vector<16x256xbf16>
    %c112_62 = arith.constant 112 : index
    %c256_63 = arith.constant 256 : index
    %70 = vector.load %arg17[%c112_62, %c256_63] : memref<144x512xbf16, #tpu.memory_space<vmem>>, vector<16x256xbf16>
    tpu.vector_store %arg17[%c112_62, %c256_63], %69 {strides = array<i32>} : memref<144x512xbf16, #tpu.memory_space<vmem>>, vector<16x256xbf16>,
    %c0_64 = arith.constant 0 : index
    %c324 = arith.constant 324 : index
    %71 = vector.load %arg18[%c0_64, %c324] : memref<16x580xbf16, #tpu.memory_space<vmem>>, vector<16x256xbf16>
    %72 = vector.broadcast %1 : vector<1x256xbf16> to vector<16x256xbf16>
    %73 = arith.mulf %71, %72 : vector<16x256xbf16>
    %c128_65 = arith.constant 128 : index
    %c256_66 = arith.constant 256 : index
    %74 = vector.load %arg17[%c128_65, %c256_66] : memref<144x512xbf16, #tpu.memory_space<vmem>>, vector<16x256xbf16>
    tpu.vector_store %arg17[%c128_65, %c256_66], %73 {strides = array<i32>} : memref<144x512xbf16, #tpu.memory_space<vmem>>, vector<16x256xbf16>,
    %c0_67 = arith.constant 0 : index
    %c0_68 = arith.constant 0 : index
    %75 = vector.load %arg2[%c0_67, %c0_68] : memref<16x144xbf16, #tpu.memory_space<vmem>>, vector<16x144xbf16>
    %c0_69 = arith.constant 0 : index
    %c0_70 = arith.constant 0 : index
    %76 = vector.load %arg17[%c0_69, %c0_70] : memref<144x512xbf16, #tpu.memory_space<vmem>>, vector<144x512xbf16>
    %cst_71 = arith.constant dense<0.000000e+00> : vector<16x512xf32>
    %77 = tpu.matmul %75, %76, %cst_71 {dimension_numbers = #tpu.dot_dimension_numbers<[1], [0], [0], [1], [0, 0, 1, 1], [], []>} : vector<16x144xbf16>, vector<144x512xbf16>, vector<16x512xf32> -> vector<16x512xf32>
    %c0_72 = arith.constant 0 : index
    %c0_73 = arith.constant 0 : index
    %78 = vector.load %arg3[%c0_72, %c0_73] : memref<16x1xf32, #tpu.memory_space<vmem>>, vector<16x1xf32>
    %79 = vector.broadcast %78 : vector<16x1xf32> to vector<16x512xf32>
    %80 = arith.addf %77, %79 : vector<16x512xf32>
    %cst_74 = arith.constant 0.000000e+00 : f32
    %81 = vector.broadcast %cst_74 : f32 to vector<16x512xf32>
    %82 = arith.maximumf %80, %81 : vector<16x512xf32>
    %83 = arith.truncf %82 : vector<16x512xf32> to vector<16x512xbf16>
    %84 = vector.extract_strided_slice %83 {offsets = [0, 0], sizes = [16, 256], strides = [1, 1]} : vector<16x512xbf16> to vector<16x256xbf16>
    %c0_75 = arith.constant 0 : index
    %c17_76 = arith.constant 17 : index
    %85 = vector.load %arg18[%c0_75, %c17_76] : memref<16x580xbf16, #tpu.memory_space<vmem>>, vector<16x256xbf16>
    tpu.vector_store %arg18[%c0_75, %c17_76], %84 {strides = array<i32>} : memref<16x580xbf16, #tpu.memory_space<vmem>>, vector<16x256xbf16>,
    %86 = vector.extract_strided_slice %83 {offsets = [0, 256], sizes = [16, 256], strides = [1, 1]} : vector<16x512xbf16> to vector<16x256xbf16>
    %c0_77 = arith.constant 0 : index
    %c307_78 = arith.constant 307 : index
    %87 = vector.load %arg18[%c0_77, %c307_78] : memref<16x580xbf16, #tpu.memory_space<vmem>>, vector<16x256xbf16>
    tpu.vector_store %arg18[%c0_77, %c307_78], %86 {strides = array<i32>} : memref<16x580xbf16, #tpu.memory_space<vmem>>, vector<16x256xbf16>,
    %c0_79 = arith.constant 0 : index
    %c0_80 = arith.constant 0 : index
    %88 = vector.load %arg18[%c0_79, %c0_80] : memref<16x580xbf16, #tpu.memory_space<vmem>>, vector<16x256xbf16>
    %89 = vector.broadcast %0 : vector<1x256xbf16> to vector<16x256xbf16>
    %90 = arith.mulf %88, %89 : vector<16x256xbf16>
    %c0_81 = arith.constant 0 : index
    %c0_82 = arith.constant 0 : index
    %91 = vector.load %arg17[%c0_81, %c0_82] : memref<144x512xbf16, #tpu.memory_space<vmem>>, vector<16x256xbf16>
    tpu.vector_store %arg17[%c0_81, %c0_82], %90 {strides = array<i32>} : memref<144x512xbf16, #tpu.memory_space<vmem>>, vector<16x256xbf16>,
    %c0_83 = arith.constant 0 : index
    %c1_84 = arith.constant 1 : index
    %92 = vector.load %arg18[%c0_83, %c1_84] : memref<16x580xbf16, #tpu.memory_space<vmem>>, vector<16x256xbf16>
    %c16_85 = arith.constant 16 : index
    %c0_86 = arith.constant 0 : index
    %93 = vector.load %arg17[%c16_85, %c0_86] : memref<144x512xbf16, #tpu.memory_space<vmem>>, vector<16x256xbf16>
    tpu.vector_store %arg17[%c16_85, %c0_86], %92 {strides = array<i32>} : memref<144x512xbf16, #tpu.memory_space<vmem>>, vector<16x256xbf16>,
    %c0_87 = arith.constant 0 : index
    %c2_88 = arith.constant 2 : index
    %94 = vector.load %arg18[%c0_87, %c2_88] : memref<16x580xbf16, #tpu.memory_space<vmem>>, vector<16x256xbf16>
    %95 = vector.broadcast %1 : vector<1x256xbf16> to vector<16x256xbf16>
    %96 = arith.mulf %94, %95 : vector<16x256xbf16>
    %c32_89 = arith.constant 32 : index
    %c0_90 = arith.constant 0 : index
    %97 = vector.load %arg17[%c32_89, %c0_90] : memref<144x512xbf16, #tpu.memory_space<vmem>>, vector<16x256xbf16>
    tpu.vector_store %arg17[%c32_89, %c0_90], %96 {strides = array<i32>} : memref<144x512xbf16, #tpu.memory_space<vmem>>, vector<16x256xbf16>,
    %c0_91 = arith.constant 0 : index
    %c16_92 = arith.constant 16 : index
    %98 = vector.load %arg18[%c0_91, %c16_92] : memref<16x580xbf16, #tpu.memory_space<vmem>>, vector<16x256xbf16>
    %99 = vector.broadcast %0 : vector<1x256xbf16> to vector<16x256xbf16>
    %100 = arith.mulf %98, %99 : vector<16x256xbf16>
    %c48_93 = arith.constant 48 : index
    %c0_94 = arith.constant 0 : index
    %101 = vector.load %arg17[%c48_93, %c0_94] : memref<144x512xbf16, #tpu.memory_space<vmem>>, vector<16x256xbf16>
    tpu.vector_store %arg17[%c48_93, %c0_94], %100 {strides = array<i32>} : memref<144x512xbf16, #tpu.memory_space<vmem>>, vector<16x256xbf16>,
    %c0_95 = arith.constant 0 : index
    %c17_96 = arith.constant 17 : index
    %102 = vector.load %arg18[%c0_95, %c17_96] : memref<16x580xbf16, #tpu.memory_space<vmem>>, vector<16x256xbf16>
    %c64_97 = arith.constant 64 : index
    %c0_98 = arith.constant 0 : index
    %103 = vector.load %arg17[%c64_97, %c0_98] : memref<144x512xbf16, #tpu.memory_space<vmem>>, vector<16x256xbf16>
    tpu.vector_store %arg17[%c64_97, %c0_98], %102 {strides = array<i32>} : memref<144x512xbf16, #tpu.memory_space<vmem>>, vector<16x256xbf16>,
    %c0_99 = arith.constant 0 : index
    %c18_100 = arith.constant 18 : index
    %104 = vector.load %arg18[%c0_99, %c18_100] : memref<16x580xbf16, #tpu.memory_space<vmem>>, vector<16x256xbf16>
    %105 = vector.broadcast %1 : vector<1x256xbf16> to vector<16x256xbf16>
    %106 = arith.mulf %104, %105 : vector<16x256xbf16>
    %c80_101 = arith.constant 80 : index
    %c0_102 = arith.constant 0 : index
    %107 = vector.load %arg17[%c80_101, %c0_102] : memref<144x512xbf16, #tpu.memory_space<vmem>>, vector<16x256xbf16>
    tpu.vector_store %arg17[%c80_101, %c0_102], %106 {strides = array<i32>} : memref<144x512xbf16, #tpu.memory_space<vmem>>, vector<16x256xbf16>,
    %c0_103 = arith.constant 0 : index
    %c32_104 = arith.constant 32 : index
    %108 = vector.load %arg18[%c0_103, %c32_104] : memref<16x580xbf16, #tpu.memory_space<vmem>>, vector<16x256xbf16>
    %109 = vector.broadcast %0 : vector<1x256xbf16> to vector<16x256xbf16>
    %110 = arith.mulf %108, %109 : vector<16x256xbf16>
    %c96_105 = arith.constant 96 : index
    %c0_106 = arith.constant 0 : index
    %111 = vector.load %arg17[%c96_105, %c0_106] : memref<144x512xbf16, #tpu.memory_space<vmem>>, vector<16x256xbf16>
    tpu.vector_store %arg17[%c96_105, %c0_106], %110 {strides = array<i32>} : memref<144x512xbf16, #tpu.memory_space<vmem>>, vector<16x256xbf16>,
    %c0_107 = arith.constant 0 : index
    %c33_108 = arith.constant 33 : index
    %112 = vector.load %arg18[%c0_107, %c33_108] : memref<16x580xbf16, #tpu.memory_space<vmem>>, vector<16x256xbf16>
    %c112_109 = arith.constant 112 : index
    %c0_110 = arith.constant 0 : index
    %113 = vector.load %arg17[%c112_109, %c0_110] : memref<144x512xbf16, #tpu.memory_space<vmem>>, vector<16x256xbf16>
    tpu.vector_store %arg17[%c112_109, %c0_110], %112 {strides = array<i32>} : memref<144x512xbf16, #tpu.memory_space<vmem>>, vector<16x256xbf16>,
    %c0_111 = arith.constant 0 : index
    %c34_112 = arith.constant 34 : index
    %114 = vector.load %arg18[%c0_111, %c34_112] : memref<16x580xbf16, #tpu.memory_space<vmem>>, vector<16x256xbf16>
    %115 = vector.broadcast %1 : vector<1x256xbf16> to vector<16x256xbf16>
    %116 = arith.mulf %114, %115 : vector<16x256xbf16>
    %c128_113 = arith.constant 128 : index
    %c0_114 = arith.constant 0 : index
    %117 = vector.load %arg17[%c128_113, %c0_114] : memref<144x512xbf16, #tpu.memory_space<vmem>>, vector<16x256xbf16>
    tpu.vector_store %arg17[%c128_113, %c0_114], %116 {strides = array<i32>} : memref<144x512xbf16, #tpu.memory_space<vmem>>, vector<16x256xbf16>,
    %c0_115 = arith.constant 0 : index
    %c290_116 = arith.constant 290 : index
    %118 = vector.load %arg18[%c0_115, %c290_116] : memref<16x580xbf16, #tpu.memory_space<vmem>>, vector<16x256xbf16>
    %119 = vector.broadcast %0 : vector<1x256xbf16> to vector<16x256xbf16>
    %120 = arith.mulf %118, %119 : vector<16x256xbf16>
    %c0_117 = arith.constant 0 : index
    %c256_118 = arith.constant 256 : index
    %121 = vector.load %arg17[%c0_117, %c256_118] : memref<144x512xbf16, #tpu.memory_space<vmem>>, vector<16x256xbf16>
    tpu.vector_store %arg17[%c0_117, %c256_118], %120 {strides = array<i32>} : memref<144x512xbf16, #tpu.memory_space<vmem>>, vector<16x256xbf16>,
    %c0_119 = arith.constant 0 : index
    %c291_120 = arith.constant 291 : index
    %122 = vector.load %arg18[%c0_119, %c291_120] : memref<16x580xbf16, #tpu.memory_space<vmem>>, vector<16x256xbf16>
    %c16_121 = arith.constant 16 : index
    %c256_122 = arith.constant 256 : index
    %123 = vector.load %arg17[%c16_121, %c256_122] : memref<144x512xbf16, #tpu.memory_space<vmem>>, vector<16x256xbf16>
    tpu.vector_store %arg17[%c16_121, %c256_122], %122 {strides = array<i32>} : memref<144x512xbf16, #tpu.memory_space<vmem>>, vector<16x256xbf16>,
    %c0_123 = arith.constant 0 : index
    %c292_124 = arith.constant 292 : index
    %124 = vector.load %arg18[%c0_123, %c292_124] : memref<16x580xbf16, #tpu.memory_space<vmem>>, vector<16x256xbf16>
    %125 = vector.broadcast %1 : vector<1x256xbf16> to vector<16x256xbf16>
    %126 = arith.mulf %124, %125 : vector<16x256xbf16>
    %c32_125 = arith.constant 32 : index
    %c256_126 = arith.constant 256 : index
    %127 = vector.load %arg17[%c32_125, %c256_126] : memref<144x512xbf16, #tpu.memory_space<vmem>>, vector<16x256xbf16>
    tpu.vector_store %arg17[%c32_125, %c256_126], %126 {strides = array<i32>} : memref<144x512xbf16, #tpu.memory_space<vmem>>, vector<16x256xbf16>,
    %c0_127 = arith.constant 0 : index
    %c306_128 = arith.constant 306 : index
    %128 = vector.load %arg18[%c0_127, %c306_128] : memref<16x580xbf16, #tpu.memory_space<vmem>>, vector<16x256xbf16>
    %129 = vector.broadcast %0 : vector<1x256xbf16> to vector<16x256xbf16>
    %130 = arith.mulf %128, %129 : vector<16x256xbf16>
    %c48_129 = arith.constant 48 : index
    %c256_130 = arith.constant 256 : index
    %131 = vector.load %arg17[%c48_129, %c256_130] : memref<144x512xbf16, #tpu.memory_space<vmem>>, vector<16x256xbf16>
    tpu.vector_store %arg17[%c48_129, %c256_130], %130 {strides = array<i32>} : memref<144x512xbf16, #tpu.memory_space<vmem>>, vector<16x256xbf16>,
    %c0_131 = arith.constant 0 : index
    %c307_132 = arith.constant 307 : index
    %132 = vector.load %arg18[%c0_131, %c307_132] : memref<16x580xbf16, #tpu.memory_space<vmem>>, vector<16x256xbf16>
    %c64_133 = arith.constant 64 : index
    %c256_134 = arith.constant 256 : index
    %133 = vector.load %arg17[%c64_133, %c256_134] : memref<144x512xbf16, #tpu.memory_space<vmem>>, vector<16x256xbf16>
    tpu.vector_store %arg17[%c64_133, %c256_134], %132 {strides = array<i32>} : memref<144x512xbf16, #tpu.memory_space<vmem>>, vector<16x256xbf16>,
    %c0_135 = arith.constant 0 : index
    %c308_136 = arith.constant 308 : index
    %134 = vector.load %arg18[%c0_135, %c308_136] : memref<16x580xbf16, #tpu.memory_space<vmem>>, vector<16x256xbf16>
    %135 = vector.broadcast %1 : vector<1x256xbf16> to vector<16x256xbf16>
    %136 = arith.mulf %134, %135 : vector<16x256xbf16>
    %c80_137 = arith.constant 80 : index
    %c256_138 = arith.constant 256 : index
    %137 = vector.load %arg17[%c80_137, %c256_138] : memref<144x512xbf16, #tpu.memory_space<vmem>>, vector<16x256xbf16>
    tpu.vector_store %arg17[%c80_137, %c256_138], %136 {strides = array<i32>} : memref<144x512xbf16, #tpu.memory_space<vmem>>, vector<16x256xbf16>,
    %c0_139 = arith.constant 0 : index
    %c322_140 = arith.constant 322 : index
    %138 = vector.load %arg18[%c0_139, %c322_140] : memref<16x580xbf16, #tpu.memory_space<vmem>>, vector<16x256xbf16>
    %139 = vector.broadcast %0 : vector<1x256xbf16> to vector<16x256xbf16>
    %140 = arith.mulf %138, %139 : vector<16x256xbf16>
    %c96_141 = arith.constant 96 : index
    %c256_142 = arith.constant 256 : index
    %141 = vector.load %arg17[%c96_141, %c256_142] : memref<144x512xbf16, #tpu.memory_space<vmem>>, vector<16x256xbf16>
    tpu.vector_store %arg17[%c96_141, %c256_142], %140 {strides = array<i32>} : memref<144x512xbf16, #tpu.memory_space<vmem>>, vector<16x256xbf16>,
    %c0_143 = arith.constant 0 : index
    %c323_144 = arith.constant 323 : index
    %142 = vector.load %arg18[%c0_143, %c323_144] : memref<16x580xbf16, #tpu.memory_space<vmem>>, vector<16x256xbf16>
    %c112_145 = arith.constant 112 : index
    %c256_146 = arith.constant 256 : index
    %143 = vector.load %arg17[%c112_145, %c256_146] : memref<144x512xbf16, #tpu.memory_space<vmem>>, vector<16x256xbf16>
    tpu.vector_store %arg17[%c112_145, %c256_146], %142 {strides = array<i32>} : memref<144x512xbf16, #tpu.memory_space<vmem>>, vector<16x256xbf16>,
    %c0_147 = arith.constant 0 : index
    %c324_148 = arith.constant 324 : index
    %144 = vector.load %arg18[%c0_147, %c324_148] : memref<16x580xbf16, #tpu.memory_space<vmem>>, vector<16x256xbf16>
    %145 = vector.broadcast %1 : vector<1x256xbf16> to vector<16x256xbf16>
    %146 = arith.mulf %144, %145 : vector<16x256xbf16>
    %c128_149 = arith.constant 128 : index
    %c256_150 = arith.constant 256 : index
    %147 = vector.load %arg17[%c128_149, %c256_150] : memref<144x512xbf16, #tpu.memory_space<vmem>>, vector<16x256xbf16>
    tpu.vector_store %arg17[%c128_149, %c256_150], %146 {strides = array<i32>} : memref<144x512xbf16, #tpu.memory_space<vmem>>, vector<16x256xbf16>,
    %c0_151 = arith.constant 0 : index
    %c0_152 = arith.constant 0 : index
    %148 = vector.load %arg4[%c0_151, %c0_152] : memref<16x144xbf16, #tpu.memory_space<vmem>>, vector<16x144xbf16>
    %c0_153 = arith.constant 0 : index
    %c0_154 = arith.constant 0 : index
    %149 = vector.load %arg17[%c0_153, %c0_154] : memref<144x512xbf16, #tpu.memory_space<vmem>>, vector<144x512xbf16>
    %cst_155 = arith.constant dense<0.000000e+00> : vector<16x512xf32>
    %150 = tpu.matmul %148, %149, %cst_155 {dimension_numbers = #tpu.dot_dimension_numbers<[1], [0], [0], [1], [0, 0, 1, 1], [], []>} : vector<16x144xbf16>, vector<144x512xbf16>, vector<16x512xf32> -> vector<16x512xf32>
    %c0_156 = arith.constant 0 : index
    %c0_157 = arith.constant 0 : index
    %151 = vector.load %arg5[%c0_156, %c0_157] : memref<16x1xf32, #tpu.memory_space<vmem>>, vector<16x1xf32>
    %152 = vector.broadcast %151 : vector<16x1xf32> to vector<16x512xf32>
    %153 = arith.addf %150, %152 : vector<16x512xf32>
    %154 = vector.extract_strided_slice %153 {offsets = [0, 0], sizes = [16, 256], strides = [1, 1]} : vector<16x512xf32> to vector<16x256xf32>
    %cst_158 = arith.constant dense<0.000000e+00> : vector<16xf32>
    %155 = vector.multi_reduction <add>, %154, %cst_158 [1] : vector<16x256xf32> to vector<16xf32>
    %156 = vector.shape_cast %155 : vector<16xf32> to vector<16x1xf32>
    %cst_159 = arith.constant 3.906250e-03 : f32
    %157 = vector.broadcast %cst_159 : f32 to vector<16x1xf32>
    %158 = arith.mulf %156, %157 : vector<16x1xf32>
    %c0_160 = arith.constant 0 : index
    %c0_161 = arith.constant 0 : index
    %159 = vector.load %arg6[%c0_160, %c0_161] : memref<16x8xf32, #tpu.memory_space<vmem>>, vector<16x8xf32>
    %160 = vector.broadcast %158 : vector<16x1xf32> to vector<16x8xf32>
    %161 = arith.mulf %159, %160 : vector<16x8xf32>
    %cst_162 = arith.constant dense<0.000000e+00> : vector<8xf32>
    %162 = vector.multi_reduction <add>, %161, %cst_162 [0] : vector<16x8xf32> to vector<8xf32>
    %163 = vector.shape_cast %162 : vector<8xf32> to vector<1x8xf32>
    %c0_163 = arith.constant 0 : index
    %c0_164 = arith.constant 0 : index
    %164 = vector.load %arg7[%c0_163, %c0_164] : memref<1x8xf32, #tpu.memory_space<vmem>>, vector<1x8xf32>
    %165 = arith.addf %163, %164 : vector<1x8xf32>
    %cst_165 = arith.constant 0.000000e+00 : f32
    %166 = vector.broadcast %cst_165 : f32 to vector<1x8xf32>
    %167 = arith.maximumf %165, %166 : vector<1x8xf32>
    %c0_166 = arith.constant 0 : index
    %c0_167 = arith.constant 0 : index
    %168 = vector.load %arg8[%c0_166, %c0_167] : memref<16x8xf32, #tpu.memory_space<vmem>>, vector<16x8xf32>
    %169 = vector.broadcast %167 : vector<1x8xf32> to vector<16x8xf32>
    %170 = arith.mulf %168, %169 : vector<16x8xf32>
    %cst_168 = arith.constant dense<0.000000e+00> : vector<16xf32>
    %171 = vector.multi_reduction <add>, %170, %cst_168 [1] : vector<16x8xf32> to vector<16xf32>
    %172 = vector.shape_cast %171 : vector<16xf32> to vector<16x1xf32>
    %c0_169 = arith.constant 0 : index
    %c0_170 = arith.constant 0 : index
    %173 = vector.load %arg9[%c0_169, %c0_170] : memref<16x1xf32, #tpu.memory_space<vmem>>, vector<16x1xf32>
    %174 = arith.addf %172, %173 : vector<16x1xf32>
    %cst_171 = arith.constant 0.000000e+00 : f32
    %175 = vector.broadcast %cst_171 : f32 to vector<16x1xf32>
    %176 = arith.subf %175, %174 : vector<16x1xf32>
    %177 = math.exp %176 : vector<16x1xf32>
    %cst_172 = arith.constant 1.000000e+00 : f32
    %178 = vector.broadcast %cst_172 : f32 to vector<16x1xf32>
    %179 = arith.addf %178, %177 : vector<16x1xf32>
    %cst_173 = arith.constant 1.000000e+00 : f32
    %180 = vector.broadcast %cst_173 : f32 to vector<16x1xf32>
    %181 = arith.divf %180, %179 : vector<16x1xf32>
    %182 = vector.broadcast %181 : vector<16x1xf32> to vector<16x256xf32>
    %183 = arith.mulf %154, %182 : vector<16x256xf32>
    %c0_174 = arith.constant 0 : index
    %c0_175 = arith.constant 0 : index
    %184 = vector.load %arg10[%c0_174, %c0_175] : memref<8x16xbf16, #tpu.memory_space<vmem>>, vector<8x16xbf16>
    %185 = arith.truncf %183 : vector<16x256xf32> to vector<16x256xbf16>
    %cst_176 = arith.constant dense<0.000000e+00> : vector<8x256xf32>
    %186 = tpu.matmul %184, %185, %cst_176 {dimension_numbers = #tpu.dot_dimension_numbers<[1], [0], [0], [1], [0, 0, 1, 1], [], []>} : vector<8x16xbf16>, vector<16x256xbf16>, vector<8x256xf32> -> vector<8x256xf32>
    %c0_177 = arith.constant 0 : index
    %c0_178 = arith.constant 0 : index
    %187 = vector.load %arg11[%c0_177, %c0_178] : memref<8x1xf32, #tpu.memory_space<vmem>>, vector<8x1xf32>
    %188 = vector.broadcast %187 : vector<8x1xf32> to vector<8x256xf32>
    %189 = arith.addf %186, %188 : vector<8x256xf32>
    %cst_179 = arith.constant 0.000000e+00 : f32
    %190 = vector.broadcast %cst_179 : f32 to vector<8x256xf32>
    %191 = arith.maximumf %189, %190 : vector<8x256xf32>
    %c0_180 = arith.constant 0 : index
    %c0_181 = arith.constant 0 : index
    %192 = vector.load %arg12[%c0_180, %c0_181] : memref<8x1xf32, #tpu.memory_space<vmem>>, vector<8x1xf32>
    %193 = vector.broadcast %192 : vector<8x1xf32> to vector<8x256xf32>
    %194 = arith.mulf %193, %191 : vector<8x256xf32>
    %cst_182 = arith.constant dense<0.000000e+00> : vector<256xf32>
    %195 = vector.multi_reduction <add>, %194, %cst_182 [0] : vector<8x256xf32> to vector<256xf32>
    %196 = vector.shape_cast %195 : vector<256xf32> to vector<1x256xf32>
    %c0_183 = arith.constant 0 : index
    %c0_184 = arith.constant 0 : index
    %197 = vector.load %arg13[%c0_183, %c0_184] : memref<1x1xf32, #tpu.memory_space<vmem>>, vector<1x1xf32>
    %198 = vector.broadcast %197 : vector<1x1xf32> to vector<1x256xf32>
    %199 = arith.addf %196, %198 : vector<1x256xf32>
    %cst_185 = arith.constant 0.000000e+00 : f32
    %200 = vector.broadcast %cst_185 : f32 to vector<1x256xf32>
    %201 = arith.subf %200, %199 : vector<1x256xf32>
    %202 = math.exp %201 : vector<1x256xf32>
    %cst_186 = arith.constant 1.000000e+00 : f32
    %203 = vector.broadcast %cst_186 : f32 to vector<1x256xf32>
    %204 = arith.addf %203, %202 : vector<1x256xf32>
    %205 = tpu.reciprocal %204 {approx = true} : vector<1x256xf32> -> vector<1x256xf32>
    %206 = vector.broadcast %205 : vector<1x256xf32> to vector<16x256xf32>
    %207 = arith.mulf %183, %206 : vector<16x256xf32>
    %c0_187 = arith.constant 0 : index
    %c0_188 = arith.constant 0 : index
    %c0_189 = arith.constant 0 : index
    %208 = vector.load %arg1[%c0_187, %c0_188, %c0_189] : memref<2x16x256xf32, #tpu.memory_space<vmem>>, vector<1x16x256xf32>
    %209 = vector.shape_cast %208 : vector<1x16x256xf32> to vector<16x256xf32>
    %210 = arith.addf %207, %209 : vector<16x256xf32>
    %cst_190 = arith.constant 0.000000e+00 : f32
    %211 = vector.broadcast %cst_190 : f32 to vector<16x256xf32>
    %212 = arith.maximumf %210, %211 : vector<16x256xf32>
    %c0_191 = arith.constant 0 : index
    %c0_192 = arith.constant 0 : index
    %c0_193 = arith.constant 0 : index
    %213 = vector.load %arg16[%c0_191, %c0_192, %c0_193] : memref<2x16x256xf32, #tpu.memory_space<vmem>>, vector<1x16x256xf32>
    %214 = vector.shape_cast %213 : vector<1x16x256xf32> to vector<16x256xf32>
    %215 = vector.shape_cast %212 : vector<16x256xf32> to vector<1x16x256xf32>
    tpu.vector_store %arg16[%c0_191, %c0_192, %c0_193], %215 {strides = array<i32>} : memref<2x16x256xf32, #tpu.memory_space<vmem>>, vector<1x16x256xf32>,
    %216 = vector.extract_strided_slice %153 {offsets = [0, 256], sizes = [16, 256], strides = [1, 1]} : vector<16x512xf32> to vector<16x256xf32>
    %cst_194 = arith.constant dense<0.000000e+00> : vector<16xf32>
    %217 = vector.multi_reduction <add>, %216, %cst_194 [1] : vector<16x256xf32> to vector<16xf32>
    %218 = vector.shape_cast %217 : vector<16xf32> to vector<16x1xf32>
    %cst_195 = arith.constant 3.906250e-03 : f32
    %219 = vector.broadcast %cst_195 : f32 to vector<16x1xf32>
    %220 = arith.mulf %218, %219 : vector<16x1xf32>
    %c0_196 = arith.constant 0 : index
    %c0_197 = arith.constant 0 : index
    %221 = vector.load %arg6[%c0_196, %c0_197] : memref<16x8xf32, #tpu.memory_space<vmem>>, vector<16x8xf32>
    %222 = vector.broadcast %220 : vector<16x1xf32> to vector<16x8xf32>
    %223 = arith.mulf %221, %222 : vector<16x8xf32>
    %cst_198 = arith.constant dense<0.000000e+00> : vector<8xf32>
    %224 = vector.multi_reduction <add>, %223, %cst_198 [0] : vector<16x8xf32> to vector<8xf32>
    %225 = vector.shape_cast %224 : vector<8xf32> to vector<1x8xf32>
    %c0_199 = arith.constant 0 : index
    %c0_200 = arith.constant 0 : index
    %226 = vector.load %arg7[%c0_199, %c0_200] : memref<1x8xf32, #tpu.memory_space<vmem>>, vector<1x8xf32>
    %227 = arith.addf %225, %226 : vector<1x8xf32>
    %cst_201 = arith.constant 0.000000e+00 : f32
    %228 = vector.broadcast %cst_201 : f32 to vector<1x8xf32>
    %229 = arith.maximumf %227, %228 : vector<1x8xf32>
    %c0_202 = arith.constant 0 : index
    %c0_203 = arith.constant 0 : index
    %230 = vector.load %arg8[%c0_202, %c0_203] : memref<16x8xf32, #tpu.memory_space<vmem>>, vector<16x8xf32>
    %231 = vector.broadcast %229 : vector<1x8xf32> to vector<16x8xf32>
    %232 = arith.mulf %230, %231 : vector<16x8xf32>
    %cst_204 = arith.constant dense<0.000000e+00> : vector<16xf32>
    %233 = vector.multi_reduction <add>, %232, %cst_204 [1] : vector<16x8xf32> to vector<16xf32>
    %234 = vector.shape_cast %233 : vector<16xf32> to vector<16x1xf32>
    %c0_205 = arith.constant 0 : index
    %c0_206 = arith.constant 0 : index
    %235 = vector.load %arg9[%c0_205, %c0_206] : memref<16x1xf32, #tpu.memory_space<vmem>>, vector<16x1xf32>
    %236 = arith.addf %234, %235 : vector<16x1xf32>
    %cst_207 = arith.constant 0.000000e+00 : f32
    %237 = vector.broadcast %cst_207 : f32 to vector<16x1xf32>
    %238 = arith.subf %237, %236 : vector<16x1xf32>
    %239 = math.exp %238 : vector<16x1xf32>
    %cst_208 = arith.constant 1.000000e+00 : f32
    %240 = vector.broadcast %cst_208 : f32 to vector<16x1xf32>
    %241 = arith.addf %240, %239 : vector<16x1xf32>
    %cst_209 = arith.constant 1.000000e+00 : f32
    %242 = vector.broadcast %cst_209 : f32 to vector<16x1xf32>
    %243 = arith.divf %242, %241 : vector<16x1xf32>
    %244 = vector.broadcast %243 : vector<16x1xf32> to vector<16x256xf32>
    %245 = arith.mulf %216, %244 : vector<16x256xf32>
    %c0_210 = arith.constant 0 : index
    %c0_211 = arith.constant 0 : index
    %246 = vector.load %arg10[%c0_210, %c0_211] : memref<8x16xbf16, #tpu.memory_space<vmem>>, vector<8x16xbf16>
    %247 = arith.truncf %245 : vector<16x256xf32> to vector<16x256xbf16>
    %cst_212 = arith.constant dense<0.000000e+00> : vector<8x256xf32>
    %248 = tpu.matmul %246, %247, %cst_212 {dimension_numbers = #tpu.dot_dimension_numbers<[1], [0], [0], [1], [0, 0, 1, 1], [], []>} : vector<8x16xbf16>, vector<16x256xbf16>, vector<8x256xf32> -> vector<8x256xf32>
    %c0_213 = arith.constant 0 : index
    %c0_214 = arith.constant 0 : index
    %249 = vector.load %arg11[%c0_213, %c0_214] : memref<8x1xf32, #tpu.memory_space<vmem>>, vector<8x1xf32>
    %250 = vector.broadcast %249 : vector<8x1xf32> to vector<8x256xf32>
    %251 = arith.addf %248, %250 : vector<8x256xf32>
    %cst_215 = arith.constant 0.000000e+00 : f32
    %252 = vector.broadcast %cst_215 : f32 to vector<8x256xf32>
    %253 = arith.maximumf %251, %252 : vector<8x256xf32>
    %c0_216 = arith.constant 0 : index
    %c0_217 = arith.constant 0 : index
    %254 = vector.load %arg12[%c0_216, %c0_217] : memref<8x1xf32, #tpu.memory_space<vmem>>, vector<8x1xf32>
    %255 = vector.broadcast %254 : vector<8x1xf32> to vector<8x256xf32>
    %256 = arith.mulf %255, %253 : vector<8x256xf32>
    %cst_218 = arith.constant dense<0.000000e+00> : vector<256xf32>
    %257 = vector.multi_reduction <add>, %256, %cst_218 [0] : vector<8x256xf32> to vector<256xf32>
    %258 = vector.shape_cast %257 : vector<256xf32> to vector<1x256xf32>
    %c0_219 = arith.constant 0 : index
    %c0_220 = arith.constant 0 : index
    %259 = vector.load %arg13[%c0_219, %c0_220] : memref<1x1xf32, #tpu.memory_space<vmem>>, vector<1x1xf32>
    %260 = vector.broadcast %259 : vector<1x1xf32> to vector<1x256xf32>
    %261 = arith.addf %258, %260 : vector<1x256xf32>
    %cst_221 = arith.constant 0.000000e+00 : f32
    %262 = vector.broadcast %cst_221 : f32 to vector<1x256xf32>
    %263 = arith.subf %262, %261 : vector<1x256xf32>
    %264 = math.exp %263 : vector<1x256xf32>
    %cst_222 = arith.constant 1.000000e+00 : f32
    %265 = vector.broadcast %cst_222 : f32 to vector<1x256xf32>
    %266 = arith.addf %265, %264 : vector<1x256xf32>
    %267 = tpu.reciprocal %266 {approx = true} : vector<1x256xf32> -> vector<1x256xf32>
    %268 = vector.broadcast %267 : vector<1x256xf32> to vector<16x256xf32>
    %269 = arith.mulf %245, %268 : vector<16x256xf32>
    %c1_223 = arith.constant 1 : index
    %c0_224 = arith.constant 0 : index
    %c0_225 = arith.constant 0 : index
    %270 = vector.load %arg1[%c1_223, %c0_224, %c0_225] : memref<2x16x256xf32, #tpu.memory_space<vmem>>, vector<1x16x256xf32>
    %271 = vector.shape_cast %270 : vector<1x16x256xf32> to vector<16x256xf32>
    %272 = arith.addf %269, %271 : vector<16x256xf32>
    %cst_226 = arith.constant 0.000000e+00 : f32
    %273 = vector.broadcast %cst_226 : f32 to vector<16x256xf32>
    %274 = arith.maximumf %272, %273 : vector<16x256xf32>
    %c1_227 = arith.constant 1 : index
    %c0_228 = arith.constant 0 : index
    %c0_229 = arith.constant 0 : index
    %275 = vector.load %arg16[%c1_227, %c0_228, %c0_229] : memref<2x16x256xf32, #tpu.memory_space<vmem>>, vector<1x16x256xf32>
    %276 = vector.shape_cast %275 : vector<1x16x256xf32> to vector<16x256xf32>
    %277 = vector.shape_cast %274 : vector<16x256xf32> to vector<1x16x256xf32>
    tpu.vector_store %arg16[%c1_227, %c0_228, %c0_229], %277 {strides = array<i32>} : memref<2x16x256xf32, #tpu.memory_space<vmem>>, vector<1x16x256xf32>,
    return
  }
  func.func @transform_0(%arg0: i32) -> (i32, i32, i32) {
    %c0_i32 = arith.constant 0 : i32
    %c0_i32_0 = arith.constant 0 : i32
    %c0_i32_1 = arith.constant 0 : i32
    return %arg0, %c0_i32, %c0_i32_0 : i32, i32, i32
  }
  func.func @transform_1(%arg0: i32) -> (i32, i32) {
    %c0_i32 = arith.constant 0 : i32
    %c0_i32_0 = arith.constant 0 : i32
    %c0_i32_1 = arith.constant 0 : i32
    return %c0_i32, %c0_i32_0 : i32, i32
  }
  func.func @transform_2(%arg0: i32) -> (i32, i32) {
    %c0_i32 = arith.constant 0 : i32
    %c0_i32_0 = arith.constant 0 : i32
    %c0_i32_1 = arith.constant 0 : i32
    return %c0_i32, %c0_i32_0 : i32, i32
  }
  func.func @transform_3(%arg0: i32) -> (i32, i32) {
    %c0_i32 = arith.constant 0 : i32
    %c0_i32_0 = arith.constant 0 : i32
    %c0_i32_1 = arith.constant 0 : i32
    return %c0_i32, %c0_i32_0 : i32, i32
  }
  func.func @transform_4(%arg0: i32) -> (i32, i32) {
    %c0_i32 = arith.constant 0 : i32
    %c0_i32_0 = arith.constant 0 : i32
    %c0_i32_1 = arith.constant 0 : i32
    return %c0_i32, %c0_i32_0 : i32, i32
  }
  func.func @transform_5(%arg0: i32) -> (i32, i32) {
    %c0_i32 = arith.constant 0 : i32
    %c0_i32_0 = arith.constant 0 : i32
    %c0_i32_1 = arith.constant 0 : i32
    return %c0_i32, %c0_i32_0 : i32, i32
  }
  func.func @transform_6(%arg0: i32) -> (i32, i32) {
    %c0_i32 = arith.constant 0 : i32
    %c0_i32_0 = arith.constant 0 : i32
    %c0_i32_1 = arith.constant 0 : i32
    return %c0_i32, %c0_i32_0 : i32, i32
  }
  func.func @transform_7(%arg0: i32) -> (i32, i32) {
    %c0_i32 = arith.constant 0 : i32
    %c0_i32_0 = arith.constant 0 : i32
    %c0_i32_1 = arith.constant 0 : i32
    return %c0_i32, %c0_i32_0 : i32, i32
  }
  func.func @transform_8(%arg0: i32) -> (i32, i32) {
    %c0_i32 = arith.constant 0 : i32
    %c0_i32_0 = arith.constant 0 : i32
    %c0_i32_1 = arith.constant 0 : i32
    return %c0_i32, %c0_i32_0 : i32, i32
  }
  func.func @transform_9(%arg0: i32) -> (i32, i32) {
    %c0_i32 = arith.constant 0 : i32
    %c0_i32_0 = arith.constant 0 : i32
    %c0_i32_1 = arith.constant 0 : i32
    return %c0_i32, %c0_i32_0 : i32, i32
  }
  func.func @transform_10(%arg0: i32) -> (i32, i32) {
    %c0_i32 = arith.constant 0 : i32
    %c0_i32_0 = arith.constant 0 : i32
    %c0_i32_1 = arith.constant 0 : i32
    return %c0_i32, %c0_i32_0 : i32, i32
  }
  func.func @transform_11(%arg0: i32) -> (i32, i32) {
    %c0_i32 = arith.constant 0 : i32
    %c0_i32_0 = arith.constant 0 : i32
    %c0_i32_1 = arith.constant 0 : i32
    return %c0_i32, %c0_i32_0 : i32, i32
  }
  func.func @transform_12(%arg0: i32) -> (i32, i32) {
    %c0_i32 = arith.constant 0 : i32
    %c0_i32_0 = arith.constant 0 : i32
    %c0_i32_1 = arith.constant 0 : i32
    return %c0_i32, %c0_i32_0 : i32, i32
  }
  func.func @transform_13(%arg0: i32) -> (i32, i32) {
    %c0_i32 = arith.constant 0 : i32
    %c0_i32_0 = arith.constant 0 : i32
    %c0_i32_1 = arith.constant 0 : i32
    return %c0_i32, %c0_i32_0 : i32, i32
  }
  func.func @transform_14(%arg0: i32) -> (i32, i32) {
    %c0_i32 = arith.constant 0 : i32
    %c0_i32_0 = arith.constant 0 : i32
    %c0_i32_1 = arith.constant 0 : i32
    return %c0_i32, %c0_i32_0 : i32, i32
  }
  func.func @transform_15(%arg0: i32) -> (i32, i32, i32) {
    %c0_i32 = arith.constant 0 : i32
    %c0_i32_0 = arith.constant 0 : i32
    %c0_i32_1 = arith.constant 0 : i32
    return %arg0, %c0_i32, %c0_i32_0 : i32, i32, i32
  }
}

</mosaic_0001>

<bundles_post_ra>
// kernel: tpu_custom_call.1
= control target key start
LH: loop header
LB: loop body
LE: loop exit
PB: predicated region body
PF: predicated region fallthrough
CT: control target
= control target key end

     0   :  { %s2707_s0 = inlined_call_operand.vmem [shape: f32[2,16,256], index: 0, kind: input, shape index: {}]   ;;  %s2708_s1 = inlined_call_operand.vmem [shape: bf16[16,144], index: 1, kind: input, shape index: {}]   ;;  %s2709_s2 = inlined_call_operand.vmem [shape: f32[16,1], index: 2, kind: input, shape index: {}]   ;;  %s2710_s3 = inlined_call_operand.vmem [shape: bf16[16,144], index: 3, kind: input, shape index: {}]   ;;  %s2711_s4 = inlined_call_operand.vmem [shape: f32[16,1], index: 4, kind: input, shape index: {}]   ;;  %s2712_s5 = inlined_call_operand.vmem [shape: f32[16,8], index: 5, kind: input, shape index: {}]   ;;  %s2713_s6 = inlined_call_operand.vmem [shape: f32[1,8], index: 6, kind: input, shape index: {}]   ;;  %s2714_s7 = inlined_call_operand.vmem [shape: f32[16,8], index: 7, kind: input, shape index: {}]   ;;  %s2715_s8 = inlined_call_operand.vmem [shape: f32[16,1], index: 8, kind: input, shape index: {}]   ;;  %s2716_s9 = inlined_call_operand.vmem [shape: bf16[8,16], index: 9, kind: input, shape index: {}]   ;;  %s2717_s10 = inlined_call_operand.vmem [shape: f32[8,1], index: 10, kind: input, shape index: {}]   ;;  %s2718_s11 = inlined_call_operand.vmem [shape: f32[8,1], index: 11, kind: input, shape index: {}]   ;;  %s2719_s12 = inlined_call_operand.<no memory space> [shape: f32[1,1], index: 12, kind: input, shape index: {}]   ;;  %s2720_s13 = inlined_call_operand.vmem [shape: bf16[1,256], index: 13, kind: input, shape index: {}]   ;;  %s2721_s14 = inlined_call_operand.vmem [shape: bf16[1,256], index: 14, kind: input, shape index: {}]   ;;  %s2722_s15 = inlined_call_operand.hbm [shape: f32[2,16,256], index: 15, kind: output, shape index: {}]  }
   0x1   :  { %v20_v0 = vstv %s2719_s12 }
   0x2   :  { %21 = vst [vmem:[#allocation4] sm:$0x1] %v20_v0 }
   0x3   :  { %v1713_v1 = vld [vmem:[%s2707_s0 + $0x20] sm:$0xff]  ;;  %v1715_v2 = vld [vmem:[%s2707_s0 + $0x30] sm:$0xff]  ;;  %v65_v3 = vld [vmem:[%s2707_s0 + $0x8] sm:$0xff]  ;;  %v122_v4 = vlaneseq  ;;  %v1829_v13 = vmov 1966171168   ;;  %s1830_s22 = smov 51  }
   0x4   :  { %v90_v5 = vpack.c.bf16 %v1715_v2, %v1713_v1  ;;  %v67_v6 = vld [vmem:[%s2707_s0 + $0x18] sm:$0xff]  ;;  %v1714_v7 = vld [vmem:[%s2707_s0 + $0x28] sm:$0xff]  ;;  %v64_v10 = vld [vmem:[%s2707_s0] sm:$0xff]  ;;  %v120_v14 = vunpack.c.l.s4 %v1829_v13  ;;  %s1831_s25 = smov 17   ;;  %vm56_vm0 = vcmask 138240   ;;  %vm58_vm1 = vcmask 277640  }
   0x5   :  { %v1716_v8 = vld [vmem:[%s2707_s0 + $0x38] sm:$0xff]  ;;  %v69_v9 = vpack.c.bf16 %v67_v6, %v65_v3  ;;  %v66_v11 = vld [vmem:[%s2707_s0 + $0x10] sm:$0xff]  ;;  %v1717_v12 = vld.sshfl [vmem:[%s2720_s13] sm:$0x11 pattern:$0x75316420] }
   0x6   :  { %94 = vrot.lane.b32.xlu0 %v90_v5, %s1830_s22  ;;  %v91_v15 = vpack.c.bf16 %v1716_v8, %v1714_v7  ;;  %v68_v16 = vpack.c.bf16 %v66_v11, %v64_v10  ;;  %v123_v17 = vshrl.u32 %v122_v4, 7  ;;  %v118_v18 = vcombine.high %v1717_v12, %v1717_v12  ;;  %v1718_v19 = vld.sshfl [vmem:[%s2721_s14] sm:$0x11 pattern:$0x75316420] }
   0x7   :  { %74 = vrot.lane.b32.xlu1 %v69_v9, %s1831_s25  ;;  %v121_v20 = vunpack.c.0.s8 %v120_v14  ;;  %v181_v21 = vcombine.high %v1718_v19, %v1718_v19  ;;  %vm60_vm2 = vcmask 417040   ;;  %v2732_v22 = vmov 0  }
   0x8   :  { %57 = vst.msk [vmem:[#allocation3] sm:$0xff] %vm56_vm0, %v2732_v22  ;;  %1765 = vset.pattern.permute.xlu1 %v2732_v22  ;;  %1766 = vset.pattern.permute.xlu0 %v2732_v22  ;;  %vm62_vm3 = vcmask 556440   ;;  %v1982_v24 = vsub.s32 0, %v123_v17 }
   0x9   :  { %v124_v23 = vsub.s32 %v121_v20, %v123_v17  ;;  %59 = vst.msk [vmem:[#allocation3 + $0x10] sm:$0xff] %vm58_vm1, %v2732_v22 }
   0xa   :  { %96 = vrot.lane.b32.xlu0 %v91_v15, %s1830_s22  ;;  %2745 = vst [vmem:[#allocation8_spill] sm:$0xff] %v1982_v24  ;;  %61 = vst.msk [vmem:[#allocation3 + $0x10] sm:$0xff] %vm60_vm2, %v2732_v22 }
   0xb   :  { %63 = vst.msk [vmem:[#allocation3 + $0x20] sm:$0xff] %vm62_vm3, %v2732_v22 }
   0xc   :  { %22 = vsyncpa [#allocation6], 0  ;;  %72 = vrot.lane.b32.xlu1 %v68_v16, %s1831_s25  ;;  %v125_v25 = vrot.slane %v1717_v12, %v124_v23  ;;  %v132_v26 = vrot.slane %v118_v18, %v124_v23  ;;  %v188_v27 = vrot.slane %v1718_v19, %v124_v23  ;;  %v195_v28 = vrot.slane %v181_v21, %v124_v23  ;;  %s1833_s13 = smov 34   ;;  %s1834_s14 = smov 36  }
   0xd   :  { %s1835_s26 = smov 2   ;;  %s1836_s27 = smov 50   ;;  %vm103_vm4 = vcmask 1047960   ;;  %vm98_vm5 = vcmask 416768   ;;  %vm81_vm6 = vcmask 1047688   ;;  %vm459_vm7 = vcmask 293888  }
   0xe   :  { %v134_v29 = vpack.i.b16 %v125_v25, %v125_v25  ;;  %v141_v30 = vpack.i.b16 %v132_v26, %v132_v26  ;;  %v197_v31 = vpack.i.b16 %v188_v27, %v188_v27  ;;  %v204_v32 = vpack.i.b16 %v195_v28, %v195_v28  ;;  %s2723_s12 = smov 16   ;;  %s1838_s28 = smov 52  }
   0xf   :  { %s1839_s29 = smov 18   ;;  %s1840_s30 = smov 66   ;;  %vm216_vm8 = vcmask 15360   ;;  %vm490_vm9 = vcmask 408576   ;;  %vm249_vm10 = vcmask 130048   ;;  %vm540_vm11 = vcmask 424960  }
  0x10   :  { %v1988_v33 = vrot.slane %v134_v29, %v1982_v24  ;;  %v1991_v34 = vrot.slane %v141_v30, %v1982_v24  ;;  %v202_v35 = vrot.slane %v197_v31, %v1982_v24  ;;  %v209_v36 = vrot.slane %v204_v32, %v1982_v24  ;;  %s1841_s16 = smov 32   ;;  %s1842_s17 = smov 68  }
  0x11   :  { %s1843_s18 = smov 93   ;;  %s1844_s19 = smov 127   ;;  %vm299_vm12 = vcmask 146432   ;;  %vm380_vm13 = vcmask 277504   ;;  %vm571_vm14 = vcmask 539648   ;;  %vm330_vm15 = vcmask 261120  }
  0x12   :  { %407 = vrot.lane.b32.xlu0 %v1988_v33, %s1833_s13  ;;  %409 = vrot.lane.b32.xlu1 %v1991_v34, %s1833_s13  ;;  %s1845_s20 = smov 77   ;;  %s1846_s21 = smov 111   ;;  %vm621_vm1 = vcmask 556032   ;;  %vm163_vm2 = vcmask 1039360   ;;  %vm233_vm3 = vcmask 1031168  }
  0x13   :  { %s1847_s23 = smov 94   ;;  %s1848_s24 = smov 92  }
  0x16   :  { %455 = vrot.lane.b32.xlu0 %v202_v35, %s1834_s14  ;;  %457 = vrot.lane.b32.xlu1 %v209_v36, %s1834_s14  ;;  %s2726_s14 = smov 76  }
  0x1a   :  { %212 = vrot.lane.b32.xlu0 %v202_v35, %s1835_s26  ;;  %214 = vrot.lane.b32.xlu1 %v209_v36, %s1835_s26  ;;  %s1851_s26 = smov 126  }
  0x1e   :  { %486 = vrot.lane.b32.xlu0 %v1988_v33, %s1836_s27  ;;  %488 = vrot.lane.b32.xlu1 %v1991_v34, %s1836_s27  ;;  %s2724_s27 = smov 62  }
  0x22   :  { %245 = vrot.lane.b32.xlu0 %v1988_v33, %s2723_s12  ;;  %247 = vrot.lane.b32.xlu1 %v1991_v34, %s2723_s12  ;;  %s1858_s12 = smov 60  }
  0x26   :  { %536 = vrot.lane.b32.xlu0 %v202_v35, %s1838_s28  ;;  %538 = vrot.lane.b32.xlu1 %v209_v36, %s1838_s28  ;;  %s2728_s28 = smov 61  }
  0x2a   :  { %295 = vrot.lane.b32.xlu0 %v202_v35, %s1839_s29  ;;  %297 = vrot.lane.b32.xlu1 %v209_v36, %s1839_s29  ;;  %s1854_s29 = smov 112  }
  0x2e   :  { %567 = vrot.lane.b32.xlu0 %v1988_v33, %s1840_s30  ;;  %569 = vrot.lane.b32.xlu1 %v1991_v34, %s1840_s30  ;;  %s1855_s30 = smov 110  }
  0x32   :  { %326 = vrot.lane.b32.xlu0 %v1988_v33, %s1841_s16  ;;  %328 = vrot.lane.b32.xlu1 %v1991_v34, %s1841_s16  ;;  %s2730_s16 = smov 96  }
  0x36   :  { %617 = vrot.lane.b32.xlu0 %v202_v35, %s1842_s17  ;;  %619 = vrot.lane.b32.xlu1 %v209_v36, %s1842_s17  ;;  %s1857_s17 = smov 95  }
  0x3a   :  { %376 = vrot.lane.b32.xlu0 %v202_v35, %s1833_s13  ;;  %378 = vrot.lane.b32.xlu1 %v209_v36, %s1833_s13  ;;  %s1849_s13 = smov 78  }
  0x78   :  { %v95_v37 = vpop.permute.xlu0 %94 }
  0x79   :  { %v75_v38 = vpop.permute.xlu1 %74 }
  0x7a   :  { %84 = vst.msk [vmem:[#allocation3 + $0x10] sm:$0xff] %vm56_vm0, %v75_v38 }
  0x7b   :  { %104 = vst.msk [vmem:[#allocation3 + $0x10] sm:$0xff] %vm103_vm4, %v95_v37 }
  0x7c   :  { %v97_v39 = vpop.permute.xlu0 %96 }
  0x7d   :  { %v2014_v40 = vsel %vm98_vm5, %v95_v37, %v97_v39  ;;  %107 = vst.msk [vmem:[#allocation3 + $0x20] sm:$0xff] %vm98_vm5, %v97_v39 }
  0x7e   :  { %v73_v41 = vpop.permute.xlu1 %72  ;;  %441 = vrot.lane.b32.xlu1 %v2014_v40, %s1843_s18 }
  0x7f   :  { %v2018_v42 = vsel %vm56_vm0, %v73_v41, %v75_v38  ;;  %82 = vst.msk [vmem:[#allocation3] sm:$0xff] %vm81_vm6, %v73_v41 }
  0x80   :  { %v148_v43 = vmul.bf16 %v1991_v34, %v2018_v42 }
  0x82   :  { %708 = vmatprep.subr.bf16.mxu0 %v148_v43  ;;  %159 = vrot.lane.b32.xlu1 %v2018_v42, %s1844_s19  ;;  %v2035_v47 = vld [vmem:[#allocation3 + $0x10] sm:$0xff] }
  0x84   :  { %v2027_v44 = vpop.permute.xlu0 %407  ;;  %v2029_v45 = vld [vmem:[#allocation3 + $0x20] sm:$0xff]  ;;  %v2057_v52 = vpop.permute.xlu1 %409 }
  0x85   :  { %443 = vrot.lane.b32.xlu0 %v2029_v45, %s1843_s18  ;;  %v417_v54 = vmul.bf16 %v2029_v45, %v2057_v52  ;;  %v415_v59 = vmul.bf16 %v2035_v47, %v2027_v44  ;;  %v2176_v28 = vsel %vm380_vm13, %v2027_v44, %v2057_v52 }
  0x86   :  { %v2033_v46 = vld [vmem:[#allocation3] sm:$0xff]  ;;  %439 = vrot.lane.b32.xlu1 %v2035_v47, %s1843_s18  ;;  %v416_v35 = vmul.bf16 %v2176_v28, %v2014_v40 }
  0x87   :  { %v147_v48 = vmul.bf16 %v2033_v46, %v1988_v33 }
  0x88   :  { %v2041_v49 = vpop.permute.xlu0 %455  ;;  %v2070_v56 = vpop.permute.xlu1 %457 }
  0x89   :  { %709 = vmatpush1.bf16.msra.mxu0 %v147_v48  ;;  %157 = vrot.lane.b32.xlu0 %v2033_v46, %s1844_s19  ;;  %v464_v57 = vmul.bf16 %v2041_v49, %v2035_v47  ;;  %v466_v62 = vmul.bf16 %v2070_v56, %v2029_v45  ;;  %v2108_v5 = vsel %vm459_vm7, %v2041_v49, %v2070_v56  ;;  %vm266_vm7 = vcmask 916480  }
  0x8a   :  { %522 = vrot.lane.b32.xlu1 %v2014_v40, %s1845_s20  ;;  %v465_v8 = vmul.bf16 %v2108_v5, %v2014_v40 }
  0x8c   :  { %v2047_v50 = vpop.permute.xlu0 %212  ;;  %v2084_v61 = vpop.permute.xlu1 %214 }
  0x8d   :  { %524 = vrot.lane.b32.xlu0 %v2029_v45, %s1845_s20  ;;  %v223_v1 = vmul.bf16 %v2035_v47, %v2084_v61  ;;  %v221_v4 = vmul.bf16 %v2047_v50, %v2033_v46  ;;  %v2121_v9 = vsel %vm216_vm8, %v2047_v50, %v2084_v61  ;;  %vm285_vm8 = vcmask 908288  }
  0x8e   :  { %281 = vrot.lane.b32.xlu1 %v2018_v42, %s1846_s21  ;;  %v222_v12 = vmul.bf16 %v2121_v9, %v2018_v42 }
  0x90   :  { %v2053_v51 = vpop.permute.xlu0 %486  ;;  %v2097_v2 = vpop.permute.xlu1 %488 }
  0x91   :  { %279 = vrot.lane.b32.xlu0 %v2033_v46, %s1846_s21  ;;  %v495_v60 = vmul.bf16 %v2053_v51, %v2035_v47  ;;  %v497_v7 = vmul.bf16 %v2097_v2, %v2029_v45  ;;  %v2133_v13 = vsel %vm490_vm9, %v2053_v51, %v2097_v2  ;;  %vm316_vm9 = vcmask 900096  }
  0x92   :  { %520 = vrot.lane.b32.xlu1 %v2035_v47, %s1845_s20  ;;  %v496_v15 = vmul.bf16 %v2133_v13, %v2014_v40 }
  0x94   :  { %v2061_v53 = vpop.permute.xlu0 %245  ;;  %v2110_v6 = vpop.permute.xlu1 %247 }
  0x95   :  { %161 = vrot.lane.b32.xlu0 %v2035_v47, %s1844_s19  ;;  %v256_v10 = vmul.bf16 %v2035_v47, %v2110_v6  ;;  %v254_v14 = vmul.bf16 %v2061_v53, %v2033_v46  ;;  %v2144_v16 = vsel %vm249_vm10, %v2061_v53, %v2110_v6 }
  0x96   :  { %425 = vrot.lane.b32.xlu1 %v417_v54, %s1847_s23  ;;  %v255_v19 = vmul.bf16 %v2144_v16, %v2018_v42 }
  0x98   :  { %v2068_v55 = vpop.permute.xlu0 %536  ;;  %v2126_v11 = vpop.permute.xlu1 %538 }
  0x99   :  { %283 = vrot.lane.b32.xlu0 %v2035_v47, %s1846_s21  ;;  %v545_v63 = vmul.bf16 %v2068_v55, %v2035_v47  ;;  %v547_v18 = vmul.bf16 %v2126_v11, %v2029_v45  ;;  %v2156_v20 = vsel %vm540_vm11, %v2068_v55, %v2126_v11  ;;  %vm397_vm11 = vcmask 769024  }
  0x9a   :  { %470 = vrot.lane.b32.xlu1 %v464_v57, %s1848_s24  ;;  %v546_v25 = vmul.bf16 %v2156_v20, %v2014_v40 }
  0x9c   :  { %v2077_v58 = vpop.permute.xlu0 %295  ;;  %v2146_v17 = vpop.permute.xlu1 %297 }
  0x9d   :  { %421 = vrot.lane.b32.xlu0 %v415_v59, %s1847_s23  ;;  %v306_v21 = vmul.bf16 %v2035_v47, %v2146_v17  ;;  %v2168_v26 = vsel %vm299_vm12, %v2077_v58, %v2146_v17  ;;  %v304_v27 = vmul.bf16 %v2077_v58, %v2033_v46  ;;  %vm2741_vm12 = vcmask 760832  }
  0x9e   :  { %501 = vrot.lane.b32.xlu1 %v495_v60, %s1849_s13  ;;  %v305_v29 = vmul.bf16 %v2168_v26, %v2018_v42 }
  0xa0   :  { %v2091_v0 = vpop.permute.xlu0 %567  ;;  %v2161_v23 = vpop.permute.xlu1 %569 }
  0xa1   :  { %474 = vrot.lane.b32.xlu0 %v466_v62, %s1848_s24  ;;  %v576_v3 = vmul.bf16 %v2091_v0, %v2035_v47  ;;  %v2183_v30 = vsel %vm571_vm14, %v2091_v0, %v2161_v23  ;;  %v578_v38 = vmul.bf16 %v2161_v23, %v2029_v45  ;;  %vm347_vm14 = vcmask 785408  }
  0xa2   :  { %551 = vrot.lane.b32.xlu1 %v545_v63, %s2726_s14  ;;  %v577_v36 = vmul.bf16 %v2183_v30, %v2014_v40 }
  0xa4   :  { %v2185_v31 = vpop.permute.xlu0 %326  ;;  %v2187_v32 = vpop.permute.xlu1 %328 }
  0xa5   :  { %231 = vrot.lane.b32.xlu0 %v223_v1, %s1851_s26  ;;  %v2197_v37 = vsel %vm330_vm15, %v2185_v31, %v2187_v32  ;;  %v337_v41 = vmul.bf16 %v2035_v47, %v2187_v32  ;;  %v335_v54 = vmul.bf16 %v2185_v31, %v2033_v46  ;;  %vm2742_vm15 = vcmask 637952  }
  0xa6   :  { %582 = vrot.lane.b32.xlu1 %v576_v3, %s2724_s27  ;;  %v336_v39 = vmul.bf16 %v2197_v37, %v2018_v42 }
  0xa8   :  { %v2208_v43 = vpop.permute.xlu0 %617  ;;  %v2210_v48 = vpop.permute.xlu1 %619 }
  0xa9   :  { %227 = vrot.lane.b32.xlu0 %v221_v4, %s1851_s26  ;;  %2746 = vst [vmem:[#allocation9_spill] sm:$0xff] %v2208_v43  ;;  %2747 = vst [vmem:[#allocation10_spill] sm:$0xff] %v2210_v48  ;;  %v2220_v57 = vsel %vm621_vm1, %v2208_v43, %v2210_v48  ;;  %v626_v3 = vmul.bf16 %v2208_v43, %v2035_v47  ;;  %v683_v4 = vld [vmem:[%s2709_s2] sm:$0xff]  ;;  %vm2743_vm1 = vcmask 629760  }
  0xaa   :  { %603 = vrot.lane.b32.xlu1 %v2014_v40, %s2728_s28  ;;  %2748 = vst [vmem:[#allocation11_spill] sm:$0xff] %v2220_v57  ;;  %v627_v62 = vmul.bf16 %v2220_v57, %v2014_v40  ;;  %v1769_v40 = vld [vmem:[%s2708_s1 + $0x4] ss:$8 sps:$4 sm:$0xff]  }
  0xab   :  { %1722 = vmatprep.mubr.msk.bf16.mxu1 %vm249_vm10, %v1769_v40  ;;  %1721 = vmatprep.mubr.msk.bf16.mxu0 %vm249_vm10, %v1769_v40 }
  0xac   :  { %v2222_v59 = vpop.permute.xlu0 %376  ;;  %v2224_v60 = vpop.permute.xlu1 %378 }
  0xad   :  { %505 = vrot.lane.b32.xlu0 %v497_v7, %s1849_s13  ;;  %2749 = vst [vmem:[#allocation12_spill] sm:$0xff] %v2222_v59  ;;  %v2235_v63 = vsel %vm380_vm13, %v2222_v59, %v2224_v60  ;;  %v387_v7 = vmul.bf16 %v2035_v47, %v2224_v60  ;;  %vm2740_vm13 = vcmask 752640  }
  0xae   :  { %472 = vrot.lane.b32.xlu1 %v465_v8, %s1848_s24  ;;  %v386_v1 = vmul.bf16 %v2235_v63, %v2018_v42  ;;  %v385_v8 = vmul.bf16 %v2222_v59, %v2033_v46 }
  0xb1   :  { %264 = vrot.lane.b32.xlu0 %v256_v10, %s1854_s29 }
  0xb2   :  { %229 = vrot.lane.b32.xlu1 %v222_v12, %s1851_s26 }
  0xb5   :  { %260 = vrot.lane.b32.xlu0 %v254_v14, %s1854_s29 }
  0xb6   :  { %503 = vrot.lane.b32.xlu1 %v496_v15, %s1849_s13 }
  0xb9   :  { %555 = vrot.lane.b32.xlu0 %v547_v18, %s2726_s14 }
  0xba   :  { %262 = vrot.lane.b32.xlu1 %v255_v19, %s1854_s29 }
  0xbd   :  { %314 = vrot.lane.b32.xlu0 %v306_v21, %s1855_s30 }
  0xbe   :  { %553 = vrot.lane.b32.xlu1 %v546_v25, %s2726_s14 }
  0xc1   :  { %310 = vrot.lane.b32.xlu0 %v304_v27, %s1855_s30 }
  0xc2   :  { %312 = vrot.lane.b32.xlu1 %v305_v29, %s1855_s30 }
  0xc5   :  { %423 = vrot.lane.b32.xlu0 %v416_v35, %s1847_s23 }
  0xc6   :  { %584 = vrot.lane.b32.xlu1 %v577_v36, %s2724_s27 }
  0xc9   :  { %586 = vrot.lane.b32.xlu0 %v578_v38, %s2724_s27 }
  0xca   :  { %343 = vrot.lane.b32.xlu1 %v336_v39, %s2730_s16 }
  0xcd   :  { %345 = vrot.lane.b32.xlu0 %v337_v41, %s2730_s16 }
  0xce   :  { %362 = vrot.lane.b32.xlu1 %v2018_v42, %s1857_s17  ;;  %v628_v42 = vmul.bf16 %v2210_v48, %v2029_v45 }
  0xd1   :  { %341 = vrot.lane.b32.xlu0 %v335_v54, %s2730_s16 }
  0xd2   :  { %601 = vrot.lane.b32.xlu1 %v2035_v47, %s2728_s28 }
  0xd5   :  { %605 = vrot.lane.b32.xlu0 %v2029_v45, %s2728_s28  ;;  %v684_v45 = vld [vmem:[%s2709_s2 + $0x8] sm:$0xff] }
  0xd6   :  { %634 = vrot.lane.b32.xlu1 %v627_v62, %s1858_s12 }
  0xd9   :  { %364 = vrot.lane.b32.xlu0 %v2035_v47, %s1857_s17 }
  0xda   :  { %393 = vrot.lane.b32.xlu1 %v386_v1, %s1847_s23 }
  0xdd   :  { %360 = vrot.lane.b32.xlu0 %v2033_v46, %s1857_s17 }
  0xde   :  { %632 = vrot.lane.b32.xlu1 %v626_v3, %s1858_s12 }
  0xe1   :  { %636 = vrot.lane.b32.xlu0 %v628_v42, %s1858_s12 }
  0xe2   :  { %687 = vperm.xlu1 %1765, %v683_v4  }
  0xe5   :  { %395 = vrot.lane.b32.xlu0 %v387_v7, %s1847_s23 }
  0xe9   :  { %391 = vrot.lane.b32.xlu0 %v385_v8, %s1847_s23 }
  0xed   :  { %692 = vperm.xlu0 %1766, %v684_v45  }
  0xf0   :  { %v2268_v10 = vpop.permute.xlu1 %441 }
  0xf4   :  { %v160_v12 = vpop.permute.xlu1 %159 }
  0xf7   :  { %v2270_v14 = vpop.permute.xlu0 %443 }
  0xf8   :  { %v2272_v15 = vpop.permute.xlu1 %439 }
  0xfb   :  { %v158_v47 = vpop.permute.xlu0 %157 }
  0xfc   :  { %v2274_v18 = vpop.permute.xlu1 %522  ;;  %v164_v36 = vsel %vm163_vm2, %v158_v47, %v160_v12 }
  0xff   :  { %v2276_v19 = vpop.permute.xlu0 %524 }
 0x100   :  { %v282_v46 = vpop.permute.xlu1 %281 }
 0x103   :  { %v280_v21 = vpop.permute.xlu0 %279 }
 0x104   :  { %v2278_v25 = vpop.permute.xlu1 %520 }
 0x107   :  { %v162_v27 = vpop.permute.xlu0 %161 }
 0x108   :  { %v165_v29 = vsel %vm163_vm2, %v160_v12, %v162_v27  ;;  %v426_v35 = vpop.permute.xlu1 %425 }
 0x109   :  { %710 = vmatprep.subr.bf16.mxu0 %v165_v29 }
 0x10a   :  { %711 = vmatpush1.bf16.msra.mxu0 %v164_v36 }
 0x10b   :  { %v284_v38 = vpop.permute.xlu0 %283 }
 0x10c   :  { %v2282_v39 = vpop.permute.xlu1 %470  ;;  %v287_v57 = vsel %vm285_vm8, %v282_v46, %v284_v38  ;;  %v446_v38 = vsel %vm2741_vm12, %v2272_v15, %v2268_v10 }
 0x10f   :  { %v422_v41 = vpop.permute.xlu0 %421 }
 0x110   :  { %v2284_v54 = vpop.permute.xlu1 %501 }
 0x113   :  { %v475_v62 = vpop.permute.xlu0 %474 }
 0x114   :  { %v2286_v1 = vpop.permute.xlu1 %551 }
 0x117   :  { %v232_v40 = vpop.permute.xlu0 %231 }
 0x118   :  { %v2288_v3 = vpop.permute.xlu1 %582 }
 0x11b   :  { %v228_v42 = vpop.permute.xlu0 %227 }
 0x11c   :  { %v2290_v4 = vpop.permute.xlu1 %603 }
 0x11f   :  { %v506_v7 = vpop.permute.xlu0 %505 }
 0x120   :  { %v473_v8 = vpop.permute.xlu1 %472 }
 0x123   :  { %v265_v45 = vpop.permute.xlu0 %264 }
 0x124   :  { %v230_v12 = vpop.permute.xlu1 %229 }
 0x125   :  { %v235_v47 = vsel %vm233_vm3, %v230_v12, %v232_v40  ;;  %v234_v27 = vsel %vm233_vm3, %v228_v42, %v230_v12  ;;  %v286_v42 = vsel %vm285_vm8, %v280_v21, %v282_v46  ;;  %v447_v46 = vsel %vm2741_vm12, %v2268_v10, %v2270_v14 }
 0x126   :  { %712 = vmatprep.subr.bf16.mxu0 %v235_v47  ;;  %v477_v14 = vsel %vm2740_vm13, %v2282_v39, %v473_v8  ;;  %vm366_vm12 = vcmask 777216  }
 0x127   :  { %v261_v29 = vpop.permute.xlu0 %260  ;;  %713 = vmatpush1.bf16.msra.mxu0 %v234_v27 }
 0x128   :  { %v504_v36 = vpop.permute.xlu1 %503 }
 0x12b   :  { %v556_v22 = vpop.permute.xlu0 %555 }
 0x12c   :  { %v263_v24 = vpop.permute.xlu1 %262 }
 0x12d   :  { %v268_v43 = vsel %vm266_vm7, %v263_v24, %v265_v45  ;;  %v267_v59 = vsel %vm266_vm7, %v261_v29, %v263_v24 }
 0x12e   :  { %714 = vmatprep.subr.bf16.mxu0 %v268_v43 }
 0x12f   :  { %v315_v48 = vpop.permute.xlu0 %314  ;;  %715 = vmatpush1.bf16.msra.mxu0 %v267_v59 }
 0x130   :  { %v554_v40 = vpop.permute.xlu1 %553  ;;  %716 = vmatprep.subr.bf16.mxu0 %v287_v57 }
 0x133   :  { %v311_v12 = vpop.permute.xlu0 %310  ;;  %717 = vmatpush1.bf16.msra.mxu0 %v286_v42 }
 0x134   :  { %v313_v47 = vpop.permute.xlu1 %312 }
 0x135   :  { %v318_v27 = vsel %vm316_vm9, %v313_v47, %v315_v48  ;;  %v317_v45 = vsel %vm316_vm9, %v311_v12, %v313_v47  ;;  %v509_v12 = vsel %vm2742_vm15, %v504_v36, %v506_v7  ;;  %v527_v7 = vsel %vm2743_vm1, %v2278_v25, %v2274_v18 }
 0x136   :  { %718 = vmatprep.subr.bf16.mxu0 %v318_v27  ;;  %v528_v27 = vsel %vm2743_vm1, %v2274_v18, %v2276_v19  ;;  %vm607_vm1 = vcmask 498688  }
 0x137   :  { %v424_v24 = vpop.permute.xlu0 %423  ;;  %719 = vmatpush1.bf16.msra.mxu0 %v317_v45 }
 0x138   :  { %v428_v43 = vsel %vm397_vm11, %v424_v24, %v426_v35  ;;  %v427_v59 = vsel %vm397_vm11, %v422_v41, %v424_v24  ;;  %v585_v57 = vpop.permute.xlu1 %584  ;;  %v478_v35 = vsel %vm2740_vm13, %v473_v8, %v475_v62  ;;  %v508_v62 = vsel %vm2742_vm15, %v2284_v54, %v504_v36 }
 0x139   :  { %751 = vmatprep.subr.bf16.mxu1 %v428_v43  ;;  %vm2744_vm13 = vcmask 621568   ;;  %vm588_vm15 = vcmask 506880  }
 0x13a   :  { %752 = vmatpush1.bf16.msra.mxu1 %v427_v59  ;;  %v559_v8 = vsel %vm2744_vm13, %v554_v40, %v556_v22  ;;  %v558_v19 = vsel %vm2744_vm13, %v2286_v1, %v554_v40  ;;  %v589_v22 = vsel %vm588_vm15, %v2288_v3, %v585_v57  ;;  %vm638_vm13 = vcmask 490496  }
 0x13b   :  { %v587_v21 = vpop.permute.xlu0 %586  ;;  %753 = vmatprep.subr.bf16.mxu1 %v447_v46 }
 0x13c   :  { %v344_v48 = vpop.permute.xlu1 %343  ;;  %v590_v36 = vsel %vm588_vm15, %v585_v57, %v587_v21  ;;  %v1767_v57 = vld [vmem:[%s2708_s1] ss:$8 sps:$4 sm:$0xff]   ;;  %s2750_s1 = smov 96  }
 0x13e   :  { %754 = vmatpush1.bf16.msra.mxu1 %v446_v38 }
 0x13f   :  { %v346_v41 = vpop.permute.xlu0 %345  ;;  %755 = vmatprep.subr.bf16.mxu1 %v478_v35 }
 0x140   :  { %v349_v29 = vsel %vm347_vm14, %v344_v48, %v346_v41  ;;  %v363_v42 = vpop.permute.xlu1 %362 }
 0x141   :  { %720 = vmatprep.subr.bf16.mxu0 %v349_v29 }
 0x142   :  { %756 = vmatpush1.bf16.msra.mxu1 %v477_v14 }
 0x143   :  { %v342_v47 = vpop.permute.xlu0 %341  ;;  %757 = vmatprep.subr.bf16.mxu1 %v509_v12 }
 0x144   :  { %v348_v10 = vsel %vm347_vm14, %v342_v47, %v344_v48  ;;  %v602_v15 = vpop.permute.xlu1 %601 }
 0x145   :  { %721 = vmatpush1.bf16.msra.mxu0 %v348_v10  ;;  %v608_v1 = vsel %vm607_vm1, %v602_v15, %v2290_v4 }
 0x146   :  { %758 = vmatpush1.bf16.msra.mxu1 %v508_v62 }
 0x147   :  { %v606_v39 = vpop.permute.xlu0 %605  ;;  %759 = vmatprep.subr.bf16.mxu1 %v528_v27 }
 0x148   :  { %v635_v45 = vpop.permute.xlu1 %634  ;;  %v609_v59 = vsel %vm607_vm1, %v2290_v4, %v606_v39 }
 0x14a   :  { %760 = vmatpush1.bf16.msra.mxu1 %v527_v7 }
 0x14b   :  { %v365_v24 = vpop.permute.xlu0 %364  ;;  %761 = vmatprep.subr.bf16.mxu1 %v559_v8 }
 0x14c   :  { %v368_v54 = vsel %vm366_vm12, %v363_v42, %v365_v24  ;;  %v394_v25 = vpop.permute.xlu1 %393 }
 0x14d   :  { %722 = vmatprep.subr.bf16.mxu0 %v368_v54 }
 0x14e   :  { %762 = vmatpush1.bf16.msra.mxu1 %v558_v19 }
 0x14f   :  { %v361_v43 = vpop.permute.xlu0 %360  ;;  %763 = vmatprep.subr.bf16.mxu1 %v590_v36 }
 0x150   :  { %v367_v18 = vsel %vm366_vm12, %v361_v43, %v363_v42  ;;  %v633_v21 = vpop.permute.xlu1 %632 }
 0x151   :  { %723 = vmatpush1.bf16.msra.mxu0 %v367_v18  ;;  %v639_v3 = vsel %vm638_vm13, %v633_v21, %v635_v45 }
 0x152   :  { %764 = vmatpush1.bf16.msra.mxu1 %v589_v22 }
 0x153   :  { %v637_v46 = vpop.permute.xlu0 %636  ;;  %765 = vmatprep.subr.bf16.mxu1 %v609_v59 }
 0x154   :  { %v640_v40 = vsel %vm638_vm13, %v635_v45, %v637_v46 }
 0x156   :  { %766 = vmatpush1.bf16.msra.mxu1 %v608_v1 }
 0x157   :  { %v396_v48 = vpop.permute.xlu0 %395  ;;  %767 = vmatprep.subr.bf16.mxu1 %v640_v40 }
 0x158   :  { %v399_v38 = vsel %vm397_vm11, %v394_v25, %v396_v48 }
 0x159   :  { %724 = vmatprep.subr.bf16.mxu0 %v399_v38 }
 0x15a   :  { %768 = vmatpush1.bf16.msra.mxu1 %v639_v3 }
 0x15b   :  { %v392_v35 = vpop.permute.xlu0 %391 }
 0x15c   :  { %v398_v4 = vsel %vm397_vm11, %v392_v35, %v394_v25 }
 0x15d   :  { %725 = vmatpush1.bf16.msra.mxu0 %v398_v4  ;;  %784 = vmatmul.mubr.bf16.vlgmr.msra.gmra.mrb[0].mxu1 %v1767_v57 }
 0x160   :  { %741 = vmatmul.mubr.bf16.vlgmr.msra.gmra.mrb[0].mxu0 %v1767_v57 }
 0x161   :  { %v688_v41 = vpop.permute.xlu1 %687 }
 0x16c   :  { %v693_v42 = vpop.permute.xlu0 %692 }
 0x230   :  { %v785_v29 = vpop.f32.mrb[0].mxu1 }
 0x231   :  { %v787_v14 = vpop.f32.mrb[1].mxu1  ;;  %v786_v12 = vadd.f32 %v785_v29, %v688_v41 }
 0x232   :  { %v788_v47 = vadd.f32 %v787_v14, %v688_v41  ;;  %v789_v10 = vpop.f32.mrb[2].mxu1 }
 0x233   :  { %v790_v15 = vadd.f32 %v789_v10, %v693_v42  ;;  %v742_v62 = vpop.f32.mrb[0].mxu0  ;;  %v791_v27 = vpop.f32.mrb[3].mxu1  ;;  %v796_v45 = vmax.f32 %v786_v12, 0.0 }
 0x234   :  { %v743_v39 = vadd.f32 %v742_v62, %v688_v41  ;;  %v792_v7 = vadd.f32 %v791_v27, %v693_v42  ;;  %v744_v8 = vpop.f32.mrb[1].mxu0  ;;  %v797_v36 = vmax.f32 %v788_v47, 0.0 }
 0x235   :  { %v800_v24 = vmax.f32 %v790_v15, 0.0  ;;  %v745_v54 = vadd.f32 %v744_v8, %v688_v41  ;;  %v746_v19 = vpop.f32.mrb[2].mxu0 }
 0x236   :  { %v801_v43 = vmax.f32 %v792_v7, 0.0  ;;  %v747_v18 = vadd.f32 %v746_v19, %v693_v42  ;;  %v748_v25 = vpop.f32.mrb[3].mxu0  ;;  %v794_v46 = vmax.f32 %v743_v39, 0.0  ;;  %v2755_v7 = vld [vmem:[#allocation10_spill] sm:$0xff]  ;;  %v1216_v19 = vld [vmem:[%s2711_s4 + $0x8] sm:$0xff] }
 0x237   :  { %v804_v22 = vpack.c.bf16 %v800_v24, %v796_v45  ;;  %v749_v59 = vadd.f32 %v748_v25, %v693_v42  ;;  %v795_v21 = vmax.f32 %v745_v54, 0.0  ;;  %v2757_v45 = vld [vmem:[#allocation9_spill] sm:$0xff]  ;;  %v1215_v54 = vld [vmem:[%s2711_s4] sm:$0xff] }
 0x238   :  { %v805_v1 = vpack.c.bf16 %v801_v43, %v797_v36  ;;  %v798_v40 = vmax.f32 %v747_v18, 0.0 }
 0x239   :  { %v799_v48 = vmax.f32 %v749_v59, 0.0  ;;  %821 = vrot.lane.b32.xlu1 %v804_v22, %s1830_s22 }
 0x23a   :  { %v802_v38 = vpack.c.bf16 %v798_v40, %v794_v46 }
 0x23b   :  { %v803_v3 = vpack.c.bf16 %v799_v48, %v795_v21 }
 0x23d   :  { %823 = vrot.lane.b32.xlu1 %v805_v1, %s1830_s22  ;;  %810 = vrot.lane.b32.xlu0 %v803_v3, %s1831_s25  ;;  %s2751_s22 = smov 76  }
 0x241   :  { %808 = vrot.lane.b32.xlu1 %v802_v38, %s1831_s25  ;;  %s2752_s25 = smov 61  }
 0x2ab   :  { %v822_v57 = vpop.permute.xlu1 %821 }
 0x2af   :  { %v824_v35 = vpop.permute.xlu1 %823  ;;  %v811_v4 = vpop.permute.xlu0 %810 }
 0x2b0   :  { %v2346_v41 = vsel %vm98_vm5, %v822_v57, %v824_v35  ;;  %831 = vst.msk [vmem:[#allocation3 + $0x20] sm:$0xff] %vm98_vm5, %v824_v35  ;;  %vm2760_vm5 = vcmask 752640  }
 0x2b1   :  { %818 = vst.msk [vmem:[#allocation3 + $0x10] sm:$0xff] %vm56_vm0, %v811_v4 }
 0x2b2   :  { %829 = vst.msk [vmem:[#allocation3 + $0x10] sm:$0xff] %vm103_vm4, %v822_v57 }
 0x2b3   :  { %v809_v29 = vpop.permute.xlu1 %808 }
 0x2b4   :  { %v2352_v42 = vsel %vm56_vm0, %v809_v29, %v811_v4  ;;  %816 = vst.msk [vmem:[#allocation3] sm:$0xff] %vm81_vm6, %v809_v29  ;;  %vm2758_vm0 = vcmask 760832   ;;  %vm2761_vm6 = vmmov %vm2760_vm5 }
 0x2b5   :  { %v835_v14 = vmul.bf16 %v2352_v42, %v1991_v34  ;;  %vm2759_vm4 = vmmov %vm2758_vm0 }
 0x2b7   :  { %1239 = vmatprep.subr.bf16.mxu0 %v835_v14 }
 0x2b9   :  { %v2357_v12 = vld [vmem:[#allocation3 + $0x10] sm:$0xff] }
 0x2ba   :  { %848 = vrot.lane.b32.xlu0 %v2357_v12, %s1844_s19  ;;  %v1000_v62 = vmul.bf16 %v2357_v12, %v2027_v44  ;;  %v861_v27 = vmul.bf16 %v2357_v12, %v2084_v61  ;;  %v1039_v44 = vmul.bf16 %v2357_v12, %v2041_v49  ;;  %v882_v61 = vmul.bf16 %v2357_v12, %v2110_v6 }
 0x2bb   :  { %v2361_v47 = vld [vmem:[#allocation3] sm:$0xff]  ;;  %v1060_v49 = vmul.bf16 %v2357_v12, %v2053_v51  ;;  %v921_v6 = vmul.bf16 %v2357_v12, %v2146_v17  ;;  %v1159_v24 = vmul.bf16 %v2357_v12, %v2757_v45 }
 0x2bc   :  { %844 = vrot.lane.b32.xlu1 %v2361_v47, %s1844_s19  ;;  %v834_v10 = vmul.bf16 %v2361_v47, %v1988_v33  ;;  %v859_v34 = vmul.bf16 %v2361_v47, %v2047_v50  ;;  %v2380_v33 = vld [vmem:[#allocation3 + $0x20] sm:$0xff]  ;;  %v880_v15 = vmul.bf16 %v2361_v47, %v2061_v53  ;;  %v919_v50 = vmul.bf16 %v2361_v47, %v2077_v58 }
 0x2bd   :  { %v860_v53 = vmul.bf16 %v2352_v42, %v2121_v9  ;;  %v881_v58 = vmul.bf16 %v2352_v42, %v2144_v16  ;;  %v920_v9 = vmul.bf16 %v2352_v42, %v2168_v26  ;;  %v941_v16 = vmul.bf16 %v2352_v42, %v2197_v37 }
 0x2be   :  { %1024 = vrot.lane.b32.xlu0 %v2357_v12, %s1843_s18  ;;  %1240 = vmatpush1.bf16.msra.mxu0 %v834_v10  ;;  %v1099_v26 = vmul.bf16 %v2357_v12, %v2068_v55  ;;  %v1041_v51 = vmul.bf16 %v2380_v33, %v2070_v56  ;;  %v1002_v17 = vmul.bf16 %v2380_v33, %v2057_v52 }
 0x2bf   :  { %v1062_v37 = vmul.bf16 %v2380_v33, %v2097_v2  ;;  %v940_v55 = vmul.bf16 %v2361_v47, %v2185_v31  ;;  %v1101_v56 = vmul.bf16 %v2380_v33, %v2126_v11  ;;  %v1001_v52 = vmul.bf16 %v2346_v41, %v2176_v28 }
 0x2c0   :  { %904 = vrot.lane.b32.xlu1 %v2361_v47, %s1846_s21  ;;  %v942_v2 = vmul.bf16 %v2357_v12, %v2187_v32  ;;  %v1040_v11 = vmul.bf16 %v2346_v41, %v2108_v5  ;;  %v1122_v31 = vmul.bf16 %v2380_v33, %v2161_v23  ;;  %v1061_v28 = vmul.bf16 %v2346_v41, %v2133_v13  ;;  %v1770_v13 = vld [vmem:[%s2710_s3 + $0x4] ss:$8 sps:$4 sm:$0xff]  }
 0x2c1   :  { %v1120_v32 = vmul.bf16 %v2357_v12, %v2091_v0  ;;  %v1100_v5 = vmul.bf16 %v2346_v41, %v2156_v20  ;;  %v1121_v0 = vmul.bf16 %v2346_v41, %v2183_v30  ;;  %v980_v20 = vmul.bf16 %v2352_v42, %v2235_v63  ;;  %1725 = vmatprep.mubr.msk.bf16.mxu0 %vm249_vm10, %v1770_v13  ;;  %v2754_v30 = vld [vmem:[#allocation11_spill] sm:$0xff]  ;;  %v2756_v63 = vld [vmem:[#allocation12_spill] sm:$0xff] }
 0x2c2   :  { %908 = vrot.lane.b32.xlu0 %v2357_v12, %s1846_s21  ;;  %v981_v23 = vmul.bf16 %v2357_v12, %v2224_v60  ;;  %1726 = vmatprep.mubr.msk.bf16.mxu1 %vm249_vm10, %v1770_v13  ;;  %v1160_v39 = vmul.bf16 %v2346_v41, %v2754_v30  ;;  %v1161_v8 = vmul.bf16 %v2380_v33, %v2755_v7 }
 0x2c3   :  { %v979_v60 = vmul.bf16 %v2361_v47, %v2756_v63 }
 0x2c4   :  { %846 = vrot.lane.b32.xlu1 %v2352_v42, %s1844_s19 }
 0x2c6   :  { %1084 = vrot.lane.b32.xlu0 %v2357_v12, %s1845_s20 }
 0x2c8   :  { %865 = vrot.lane.b32.xlu1 %v859_v34, %s1851_s26 }
 0x2ca   :  { %1028 = vrot.lane.b32.xlu0 %v2380_v33, %s1843_s18 }
 0x2cc   :  { %886 = vrot.lane.b32.xlu1 %v880_v15, %s1854_s29 }
 0x2ce   :  { %1088 = vrot.lane.b32.xlu0 %v2380_v33, %s1845_s20 }
 0x2d0   :  { %906 = vrot.lane.b32.xlu1 %v2352_v42, %s1846_s21 }
 0x2d2   :  { %1006 = vrot.lane.b32.xlu0 %v1000_v62, %s1847_s23 }
 0x2d4   :  { %925 = vrot.lane.b32.xlu1 %v919_v50, %s1855_s30 }
 0x2d6   :  { %869 = vrot.lane.b32.xlu0 %v861_v27, %s1851_s26 }
 0x2d8   :  { %867 = vrot.lane.b32.xlu1 %v860_v53, %s1851_s26 }
 0x2da   :  { %1045 = vrot.lane.b32.xlu0 %v1039_v44, %s1848_s24 }
 0x2dc   :  { %888 = vrot.lane.b32.xlu1 %v881_v58, %s1854_s29 }
 0x2de   :  { %890 = vrot.lane.b32.xlu0 %v882_v61, %s1854_s29 }
 0x2e0   :  { %927 = vrot.lane.b32.xlu1 %v920_v9, %s1855_s30 }
 0x2e2   :  { %1066 = vrot.lane.b32.xlu0 %v1060_v49, %s1849_s13 }
 0x2e4   :  { %948 = vrot.lane.b32.xlu1 %v941_v16, %s2750_s1 }
 0x2e6   :  { %929 = vrot.lane.b32.xlu0 %v921_v6, %s1855_s30 }
 0x2e8   :  { %1026 = vrot.lane.b32.xlu1 %v2346_v41, %s1843_s18  ;;  %s2753_s18 = smov 62  }
 0x2ea   :  { %1105 = vrot.lane.b32.xlu0 %v1099_v26, %s2751_s22 }
 0x2ec   :  { %1086 = vrot.lane.b32.xlu1 %v2346_v41, %s1845_s20 }
 0x2ee   :  { %1049 = vrot.lane.b32.xlu0 %v1041_v51, %s1848_s24 }
 0x2f0   :  { %1010 = vrot.lane.b32.xlu1 %v1002_v17, %s1847_s23 }
 0x2f2   :  { %1070 = vrot.lane.b32.xlu0 %v1062_v37, %s1849_s13 }
 0x2f4   :  { %946 = vrot.lane.b32.xlu1 %v940_v55, %s2750_s1 }
 0x2f6   :  { %1109 = vrot.lane.b32.xlu0 %v1101_v56, %s2751_s22 }
 0x2f8   :  { %966 = vrot.lane.b32.xlu1 %v2352_v42, %s1857_s17 }
 0x2fa   :  { %1008 = vrot.lane.b32.xlu0 %v1001_v52, %s1847_s23 }
 0x2fc   :  { %1146 = vrot.lane.b32.xlu1 %v2346_v41, %s2752_s25 }
 0x2fe   :  { %950 = vrot.lane.b32.xlu0 %v942_v2, %s2750_s1  ;;  %s1859_s1 = smov [#allocation5]  }
 0x300   :  { %1047 = vrot.lane.b32.xlu1 %v1040_v11, %s1848_s24 }
 0x302   :  { %1130 = vrot.lane.b32.xlu0 %v1122_v31, %s2753_s18 }
 0x304   :  { %1068 = vrot.lane.b32.xlu1 %v1061_v28, %s1849_s13 }
 0x306   :  { %1126 = vrot.lane.b32.xlu0 %v1120_v32, %s2753_s18 }
 0x308   :  { %964 = vrot.lane.b32.xlu1 %v2361_v47, %s1857_s17 }
 0x30a   :  { %968 = vrot.lane.b32.xlu0 %v2357_v12, %s1857_s17 }
 0x30c   :  { %1107 = vrot.lane.b32.xlu1 %v1100_v5, %s2751_s22 }
 0x30e   :  { %1148 = vrot.lane.b32.xlu0 %v2380_v33, %s2752_s25 }
 0x310   :  { %1128 = vrot.lane.b32.xlu1 %v1121_v0, %s2753_s18 }
 0x312   :  { %1144 = vrot.lane.b32.xlu0 %v2357_v12, %s2752_s25 }
 0x314   :  { %987 = vrot.lane.b32.xlu1 %v980_v20, %s1847_s23 }
 0x316   :  { %989 = vrot.lane.b32.xlu0 %v981_v23, %s1847_s23 }
 0x318   :  { %1167 = vrot.lane.b32.xlu1 %v1160_v39, %s1858_s12 }
 0x31a   :  { %1169 = vrot.lane.b32.xlu0 %v1161_v8, %s1858_s12 }
 0x31c   :  { %985 = vrot.lane.b32.xlu1 %v979_v60, %s1847_s23 }
 0x31e   :  { %1165 = vrot.lane.b32.xlu0 %v1159_v24, %s1858_s12 }
 0x320   :  { %1219 = vperm.xlu1 %1765, %v1215_v54  }
 0x322   :  { %1224 = vperm.xlu0 %1766, %v1216_v19  }
 0x32c   :  { %v849_v36 = vpop.permute.xlu0 %848 }
 0x32e   :  { %v845_v43 = vpop.permute.xlu1 %844 }
 0x330   :  { %v1025_v18 = vpop.permute.xlu0 %1024 }
 0x332   :  { %v905_v25 = vpop.permute.xlu1 %904 }
 0x334   :  { %v909_v22 = vpop.permute.xlu0 %908 }
 0x336   :  { %v847_v59 = vpop.permute.xlu1 %846 }
 0x337   :  { %v850_v46 = vsel %vm163_vm2, %v845_v43, %v847_v59  ;;  %v851_v40 = vsel %vm163_vm2, %v847_v59, %v849_v36  ;;  %vm2762_vm2 = vcmask 637952  }
 0x338   :  { %v2512_v1 = vpop.permute.xlu0 %1084  ;;  %1241 = vmatprep.subr.bf16.mxu0 %v851_v40 }
 0x339   :  { %1242 = vmatpush1.bf16.msra.mxu0 %v850_v46 }
 0x33a   :  { %v866_v21 = vpop.permute.xlu1 %865 }
 0x33c   :  { %v1029_v48 = vpop.permute.xlu0 %1028 }
 0x33e   :  { %v887_v38 = vpop.permute.xlu1 %886 }
 0x340   :  { %v2515_v3 = vpop.permute.xlu0 %1088 }
 0x342   :  { %v907_v57 = vpop.permute.xlu1 %906 }
 0x343   :  { %v911_v62 = vsel %vm285_vm8, %v907_v57, %v909_v22  ;;  %v910_v27 = vsel %vm285_vm8, %v905_v25, %v907_v57 }
 0x344   :  { %v1007_v35 = vpop.permute.xlu0 %1006 }
 0x346   :  { %v926_v4 = vpop.permute.xlu1 %925 }
 0x348   :  { %v870_v41 = vpop.permute.xlu0 %869 }
 0x34a   :  { %v868_v29 = vpop.permute.xlu1 %867 }
 0x34b   :  { %v871_v42 = vsel %vm233_vm3, %v866_v21, %v868_v29  ;;  %v872_v12 = vsel %vm233_vm3, %v868_v29, %v870_v41  ;;  %vm2763_vm3 = vmmov %vm2762_vm2 }
 0x34c   :  { %v1046_v14 = vpop.permute.xlu0 %1045  ;;  %1243 = vmatprep.subr.bf16.mxu0 %v872_v12  ;;  %v1772_v12 = vld [vmem:[%s2710_s3] ss:$8 sps:$4 sm:$0xff]  }
 0x34d   :  { %1244 = vmatpush1.bf16.msra.mxu0 %v871_v42 }
 0x34e   :  { %v889_v47 = vpop.permute.xlu1 %888 }
 0x34f   :  { %v892_v33 = vsel %vm266_vm7, %v887_v38, %v889_v47 }
 0x350   :  { %v891_v10 = vpop.permute.xlu0 %890 }
 0x351   :  { %v893_v34 = vsel %vm266_vm7, %v889_v47, %v891_v10  ;;  %vm2764_vm7 = vcmask 629760   ;;  %v2768_v10 = vmov 0  }
 0x352   :  { %1245 = vmatprep.subr.bf16.mxu0 %v893_v34  ;;  %v928_v15 = vpop.permute.xlu1 %927  ;;  %vm2765_vm8 = vmmov %vm2764_vm7 }
 0x353   :  { %1246 = vmatpush1.bf16.msra.mxu0 %v892_v33  ;;  %v931_v61 = vsel %vm316_vm9, %v926_v4, %v928_v15 }
 0x354   :  { %v1067_v50 = vpop.permute.xlu0 %1066  ;;  %1247 = vmatprep.subr.bf16.mxu0 %v911_v62 }
 0x356   :  { %v949_v53 = vpop.permute.xlu1 %948 }
 0x357   :  { %1248 = vmatpush1.bf16.msra.mxu0 %v910_v27 }
 0x358   :  { %v930_v44 = vpop.permute.xlu0 %929 }
 0x359   :  { %v932_v58 = vsel %vm316_vm9, %v928_v15, %v930_v44  ;;  %vm2766_vm9 = vcmask 621568  }
 0x35a   :  { %1249 = vmatprep.subr.bf16.mxu0 %v932_v58  ;;  %v1027_v9 = vpop.permute.xlu1 %1026 }
 0x35b   :  { %1250 = vmatpush1.bf16.msra.mxu0 %v931_v61  ;;  %v1031_v31 = vsel %vm2758_vm0, %v1027_v9, %v1029_v48  ;;  %v1030_v5 = vsel %vm2759_vm4, %v1025_v18, %v1027_v9 }
 0x35c   :  { %v1106_v49 = vpop.permute.xlu0 %1105 }
 0x35e   :  { %v1087_v16 = vpop.permute.xlu1 %1086 }
 0x35f   :  { %v1091_v45 = vsel %vm2764_vm7, %v1087_v16, %v2515_v3  ;;  %v1090_v19 = vsel %vm2765_vm8, %v2512_v1, %v1087_v16 }
 0x360   :  { %v1050_v6 = vpop.permute.xlu0 %1049 }
 0x362   :  { %v1011_v26 = vpop.permute.xlu1 %1010 }
 0x364   :  { %v1071_v51 = vpop.permute.xlu0 %1070 }
 0x366   :  { %v947_v17 = vpop.permute.xlu1 %946 }
 0x367   :  { %v952_v0 = vsel %vm347_vm14, %v947_v17, %v949_v53 }
 0x368   :  { %v1110_v37 = vpop.permute.xlu0 %1109 }
 0x36a   :  { %v967_v55 = vpop.permute.xlu1 %966 }
 0x36c   :  { %v1009_v56 = vpop.permute.xlu0 %1008 }
 0x36d   :  { %v1012_v52 = vsel %vm397_vm11, %v1007_v35, %v1009_v56  ;;  %v1013_v2 = vsel %vm397_vm11, %v1009_v56, %v1011_v26 }
 0x36e   :  { %1282 = vmatprep.subr.bf16.mxu1 %v1013_v2  ;;  %v1147_v11 = vpop.permute.xlu1 %1146 }
 0x36f   :  { %1283 = vmatpush1.bf16.msra.mxu1 %v1012_v52 }
 0x370   :  { %v951_v28 = vpop.permute.xlu0 %950  ;;  %1284 = vmatprep.subr.bf16.mxu1 %v1031_v31 }
 0x371   :  { %v953_v32 = vsel %vm347_vm14, %v949_v53, %v951_v28  ;;  %vm2767_vm14 = vmmov %vm2766_vm9 }
 0x372   :  { %1251 = vmatprep.subr.bf16.mxu0 %v953_v32  ;;  %v1048_v13 = vpop.permute.xlu1 %1047  ;;  %v1334_v32 = vld [vmem:[%s2712_s5 + $0x8] sm:$0xff] }
 0x373   :  { %1285 = vmatpush1.bf16.msra.mxu1 %v1030_v5  ;;  %1252 = vmatpush1.bf16.msra.mxu0 %v952_v0  ;;  %v1052_v23 = vsel %vm2760_vm5, %v1048_v13, %v1050_v6  ;;  %v1051_v30 = vsel %vm2761_vm6, %v1046_v14, %v1048_v13 }
 0x374   :  { %v1131_v20 = vpop.permute.xlu0 %1130  ;;  %1286 = vmatprep.subr.bf16.mxu1 %v1052_v23 }
 0x376   :  { %v1069_v39 = vpop.permute.xlu1 %1068 }
 0x377   :  { %1287 = vmatpush1.bf16.msra.mxu1 %v1051_v30  ;;  %v1073_v8 = vsel %vm2762_vm2, %v1069_v39, %v1071_v51  ;;  %v1072_v63 = vsel %vm2763_vm3, %v1067_v50, %v1069_v39 }
 0x378   :  { %v1127_v7 = vpop.permute.xlu0 %1126  ;;  %1288 = vmatprep.subr.bf16.mxu1 %v1073_v8 }
 0x37a   :  { %v965_v60 = vpop.permute.xlu1 %964 }
 0x37b   :  { %1289 = vmatpush1.bf16.msra.mxu1 %v1072_v63  ;;  %v970_v36 = vsel %vm366_vm12, %v965_v60, %v967_v55 }
 0x37c   :  { %v969_v24 = vpop.permute.xlu0 %968  ;;  %1290 = vmatprep.subr.bf16.mxu1 %v1091_v45 }
 0x37d   :  { %v971_v54 = vsel %vm366_vm12, %v967_v55, %v969_v24 }
 0x37e   :  { %1253 = vmatprep.subr.bf16.mxu0 %v971_v54  ;;  %v1108_v43 = vpop.permute.xlu1 %1107 }
 0x37f   :  { %1291 = vmatpush1.bf16.msra.mxu1 %v1090_v19  ;;  %1254 = vmatpush1.bf16.msra.mxu0 %v970_v36  ;;  %v1112_v25 = vsel %vm2766_vm9, %v1108_v43, %v1110_v37  ;;  %v1111_v22 = vsel %vm2767_vm14, %v1106_v49, %v1108_v43 }
 0x380   :  { %v1149_v18 = vpop.permute.xlu0 %1148  ;;  %1292 = vmatprep.subr.bf16.mxu1 %v1112_v25 }
 0x381   :  { %v1151_v48 = vsel %vm607_vm1, %v1147_v11, %v1149_v18 }
 0x382   :  { %v1129_v59 = vpop.permute.xlu1 %1128 }
 0x383   :  { %1293 = vmatpush1.bf16.msra.mxu1 %v1111_v22  ;;  %v1133_v40 = vsel %vm588_vm15, %v1129_v59, %v1131_v20  ;;  %v1132_v1 = vsel %vm588_vm15, %v1127_v7, %v1129_v59 }
 0x384   :  { %v1145_v46 = vpop.permute.xlu0 %1144  ;;  %1294 = vmatprep.subr.bf16.mxu1 %v1133_v40 }
 0x385   :  { %v1150_v57 = vsel %vm607_vm1, %v1145_v46, %v1147_v11  ;;  %v1333_v11 = vld [vmem:[%s2712_s5] sm:$0xff] }
 0x386   :  { %v988_v21 = vpop.permute.xlu1 %987 }
 0x387   :  { %1295 = vmatpush1.bf16.msra.mxu1 %v1132_v1 }
 0x388   :  { %v990_v38 = vpop.permute.xlu0 %989  ;;  %1296 = vmatprep.subr.bf16.mxu1 %v1151_v48 }
 0x389   :  { %v992_v3 = vsel %vm397_vm11, %v988_v21, %v990_v38 }
 0x38a   :  { %1255 = vmatprep.subr.bf16.mxu0 %v992_v3  ;;  %v1168_v35 = vpop.permute.xlu1 %1167 }
 0x38b   :  { %1297 = vmatpush1.bf16.msra.mxu1 %v1150_v57 }
 0x38c   :  { %v1170_v4 = vpop.permute.xlu0 %1169 }
 0x38d   :  { %v1172_v41 = vsel %vm638_vm13, %v1168_v35, %v1170_v4 }
 0x38e   :  { %1298 = vmatprep.subr.bf16.mxu1 %v1172_v41  ;;  %v986_v29 = vpop.permute.xlu1 %985 }
 0x38f   :  { %v991_v42 = vsel %vm397_vm11, %v986_v29, %v988_v21  ;;  %vm1337_vm11 = vcmask 64512   ;;  %v1347_v21 = vld [vmem:[%s2713_s6] sm:$0x1]  ;;  %v1351_v29 = vld [vmem:[%s2714_s7 + $0x8] sm:$0xff] }
 0x390   :  { %v1166_v14 = vpop.permute.xlu0 %1165  ;;  %1256 = vmatpush1.bf16.msra.mxu0 %v991_v42  ;;  %v1350_v42 = vld [vmem:[%s2714_s7] sm:$0xff] }
 0x391   :  { %v1171_v47 = vsel %vm638_vm13, %v1166_v14, %v1168_v35  ;;  %v1532_v35 = vld [vmem:[%s2713_s6] sm:$0x1]  ;;  %v2769_v14 = vld [vmem:[#allocation8_spill] sm:$0xff]  ;;  %s1702_s6 = sshll.u32 %s1859_s1, 4  ;;  %s1703_s6 = int_to_ptr.vmem [resolvable:$true] %s1702_s6 }
 0x392   :  { %1299 = vmatpush1.bf16.msra.mxu1 %v1171_v47  ;;  %p1810_p1 = scmp.lt.s32.totalorder %s1703_s6, %s1703_s6 }
 0x393   :  { %1272 = vmatmul.mubr.bf16.vlgmr.msra.gmra.mrb[4].mxu0 %v1772_v12 }
 0x394   :  { %1438 = vmatprep.mubr.bf16.mxu0 %v2768_v10 }
 0x395   :  { %1315 = vmatmul.mubr.bf16.vlgmr.msra.gmra.mrb[4].mxu1 %v1772_v12 }
 0x396   :  { %1623 = vmatprep.mubr.bf16.mxu1 %v2768_v10 }
 0x39f   :  { %v1220_v34 = vpop.permute.xlu1 %1219 }
 0x3a1   :  { %v1225_v33 = vpop.permute.xlu0 %1224 }
 0x466   :  { %v1273_v15 = vpop.f32.mrb[4].mxu0 }
 0x467   :  { %v2556_v62 = vadd.f32 %v1273_v15, %v1220_v34  ;;  %v1275_v50 = vpop.f32.mrb[5].mxu0 }
 0x468   :  { %v1316_v27 = vpop.f32.mrb[4].mxu1  ;;  %v2558_v53 = vadd.f32 %v1275_v50, %v1220_v34  ;;  %v1277_v44 = vpop.f32.mrb[6].mxu0 }
 0x469   :  { %v1318_v58 = vpop.f32.mrb[5].mxu1  ;;  %v2560_v61 = vadd.f32 %v1277_v44, %v1225_v33  ;;  %v1279_v9 = vpop.f32.mrb[7].mxu0  ;;  %v2570_v37 = vadd.f32 %v1316_v27, %v1220_v34 }
 0x46a   :  { %v1320_v49 = vpop.f32.mrb[6].mxu1  ;;  %v1325_v16 = vadd.f32 %v2558_v53, %v2556_v62  ;;  %v2564_v6 = vadd.f32 %v1279_v9, %v1225_v33  ;;  %v2572_v55 = vadd.f32 %v1318_v58, %v1220_v34 }
 0x46b   :  { %v2566_v26 = vadd.f32 %v1320_v49, %v1225_v33  ;;  %v1322_v51 = vpop.f32.mrb[7].mxu1 }
 0x46c   :  { %v2568_v17 = vadd.f32 %v1322_v51, %v1225_v33  ;;  %v1328_v56 = vadd.f32 %v2564_v6, %v2560_v61  ;;  %1326 = vadd.xlane.f32.xlu1 %v1325_v16  ;;  %v1511_v2 = vadd.f32 %v2572_v55, %v2570_v37  ;;  %v1364_v16 = vld [vmem:[%s2715_s8] sm:$0xff]  ;;  %v1365_v51 = vld [vmem:[%s2715_s8 + $0x8] sm:$0xff] }
 0x46e   :  { %v1514_v52 = vadd.f32 %v2568_v17, %v2566_v26  ;;  %1329 = vadd.xlane.f32.xlu0 %v1328_v56 }
 0x470   :  { %1515 = vadd.xlane.f32.xlu1 %v1514_v52 }
 0x472   :  { %1512 = vadd.xlane.f32.xlu0 %v1511_v2 }
 0x4f9   :  { %v1327_v31 = vpop.xlane.xlu1 %1326 }
 0x4fa   :  { %v1331_v28 = vmul.f32 0.00390625, %v1327_v31 }
 0x4fb   :  { %v1330_v5 = vpop.xlane.xlu0 %1329 }
 0x4fc   :  { %v1335_v0 = vmul.f32 %v1333_v11, %v1331_v28  ;;  %v1332_v13 = vmul.f32 0.00390625, %v1330_v5 }
 0x4fd   :  { %v1516_v20 = vpop.xlane.xlu1 %1515 }
 0x4fe   :  { %v1336_v23 = vmul.f32 %v1334_v32, %v1332_v13  ;;  %v1518_v30 = vmul.f32 0.00390625, %v1516_v20  ;;  %v1338_v7 = vsel %vm1337_vm11, %v1335_v0, 0.0 }
 0x4ff   :  { %v1513_v39 = vpop.xlane.xlu0 %1512 }
 0x500   :  { %v1339_v8 = vsel %vm1337_vm11, %v1336_v23, 0.0  ;;  %v1522_v63 = vmul.f32 %v1518_v30, %v1334_v32  ;;  %v1517_v60 = vmul.f32 0.00390625, %v1513_v39 }
 0x501   :  { %v1340_v45 = vadd.f32 %v1339_v8, %v1338_v7 }
 0x502   :  { %v1521_v24 = vmul.f32 %v1517_v60, %v1333_v11  ;;  %v1524_v19 = vsel %vm1337_vm11, %v1522_v63, 0.0 }
 0x503   :  { %v1341_v54 = vrot.slane %v1340_v45, 4 }
 0x504   :  { %v1523_v36 = vsel %vm1337_vm11, %v1521_v24, 0.0 }
 0x505   :  { %v1342_v43 = vadd.f32 %v1341_v54, %v1340_v45  ;;  %v1525_v18 = vadd.f32 %v1524_v19, %v1523_v36 }
 0x507   :  { %v1343_v25 = vrot.slane %v1342_v43, 2  ;;  %v1526_v22 = vrot.slane %v1525_v18, 4 }
 0x509   :  { %v1344_v59 = vadd.f32 %v1343_v25, %v1342_v43  ;;  %v1527_v46 = vadd.f32 %v1526_v22, %v1525_v18 }
 0x50b   :  { %v1345_v40 = vrot.slane %v1344_v59, 1  ;;  %v1528_v1 = vrot.slane %v1527_v46, 2 }
 0x50d   :  { %v1529_v48 = vadd.f32 %v1528_v1, %v1527_v46  ;;  %v1346_v38 = vadd.f32 %v1345_v40, %v1344_v59  ;;  %v1397_v46 = vld [vmem:[%s2717_s10] sm:$0xff]  ;;  %v1469_v1 = vld [vmem:[#allocation4] sm:$0x1] }
 0x50e   :  { %v1449_v40 = vld [vmem:[%s2718_s11] sm:$0xff] }
 0x50f   :  { %v1530_v3 = vrot.slane %v1529_v48, 1  ;;  %v1348_v57 = vadd.f32 %v1347_v21, %v1346_v38  ;;  %v1654_v21 = vld [vmem:[#allocation4] sm:$0x1] }
 0x511   :  { %v1349_v4 = vmax.f32 %v1348_v57, 0.0  ;;  %v1531_v41 = vadd.f32 %v1530_v3, %v1529_v48 }
 0x513   :  { %v1355_v12 = vrot.slane %v1349_v4, %v2769_v14  ;;  %v1533_v47 = vadd.f32 %v1532_v35, %v1531_v41 }
 0x515   :  { %v1357_v10 = vmul.f32 %v1355_v12, %v1351_v29  ;;  %v1356_v34 = vmul.f32 %v1355_v12, %v1350_v42  ;;  %v1534_v33 = vmax.f32 %v1533_v47, 0.0  ;;  %v1394_v47 = vld [vmem:[%s2716_s9] sm:$0xf] }
 0x517   :  { %v1361_v15 = vsel %vm1337_vm11, %v1357_v10, 0.0  ;;  %v1358_v50 = vsel %vm1337_vm11, %v1356_v34, 0.0  ;;  %v1540_v27 = vrot.slane %v1534_v33, %v2769_v14 }
 0x518   :  { %1362 = vadd.xlane.f32.xlu1 %v1361_v15  ;;  %1359 = vadd.xlane.f32.xlu0 %v1358_v50 }
 0x519   :  { %v1542_v44 = vmul.f32 %v1540_v27, %v1351_v29  ;;  %v1541_v58 = vmul.f32 %v1540_v27, %v1350_v42 }
 0x51b   :  { %v1546_v9 = vsel %vm1337_vm11, %v1542_v44, 0.0  ;;  %v1543_v49 = vsel %vm1337_vm11, %v1541_v58, 0.0 }
 0x51c   :  { %1547 = vadd.xlane.f32.xlu1 %v1546_v9  ;;  %1544 = vadd.xlane.f32.xlu0 %v1543_v49 }
 0x5a5   :  { %v1360_v56 = vpop.xlane.xlu0 %1359  ;;  %v1363_v52 = vpop.xlane.xlu1 %1362 }
 0x5a6   :  { %v1366_v2 = vadd.f32 %v1364_v16, %v1360_v56  ;;  %v1367_v11 = vadd.f32 %v1365_v51, %v1363_v52 }
 0x5a8   :  { %v1368_v31 = vsub.f32 0.0, %v1366_v2  ;;  %v1369_v28 = vsub.f32 0.0, %v1367_v11 }
 0x5a9   :  { %v1545_v32 = vpop.xlane.xlu0 %1544  ;;  %v1548_v5 = vpop.xlane.xlu1 %1547 }
 0x5aa   :  { %v1370_v0 = vmul.f32 1.442695, %v1368_v31  ;;  %v1372_v13 = vmul.f32 1.442695, %v1369_v28  ;;  %v1551_v20 = vadd.f32 %v1545_v32, %v1364_v16  ;;  %v1552_v23 = vadd.f32 %v1548_v5, %v1365_v51 }
 0x5ac   :  { %1773 = vpow2.f32 %v1370_v0  ;;  %v1553_v30 = vsub.f32 0.0, %v1551_v20  ;;  %v1554_v39 = vsub.f32 0.0, %v1552_v23 }
 0x5ad   :  { %1775 = vpow2.f32 %v1372_v13 }
 0x5ae   :  { %v1555_v7 = vmul.f32 1.442695, %v1553_v30  ;;  %v1557_v8 = vmul.f32 1.442695, %v1554_v39 }
 0x5b0   :  { %1777 = vpow2.f32 %v1555_v7 }
 0x5b1   :  { %1779 = vpow2.f32 %v1557_v8 }
 0x5b6   :  { %v1774_v63 = vpop.eup %1773 }
 0x5b7   :  { %v1776_v60 = vpop.eup %1775  ;;  %v1374_v45 = vadd.f32 1.0, %v1774_v63 }
 0x5b8   :  { %v1375_v24 = vadd.f32 1.0, %v1776_v60 }
 0x5b9   :  { %1781 = vrcp.f32 %v1374_v45 }
 0x5ba   :  { %v1778_v54 = vpop.eup %1777  ;;  %1783 = vrcp.f32 %v1375_v24 }
 0x5bb   :  { %v1780_v19 = vpop.eup %1779  ;;  %v1559_v36 = vadd.f32 1.0, %v1778_v54 }
 0x5bc   :  { %v1560_v43 = vadd.f32 1.0, %v1780_v19 }
 0x5bd   :  { %1785 = vrcp.f32 %v1559_v36 }
 0x5be   :  { %1787 = vrcp.f32 %v1560_v43 }
 0x5c3   :  { %v1782_v18 = vpop.eup %1781 }
 0x5c4   :  { %v1784_v25 = vpop.eup %1783  ;;  %1382 = vperm.xlu0 %1766, %v1782_v18  }
 0x5c5   :  { %1387 = vperm.xlu1 %1765, %v1784_v25  }
 0x5c7   :  { %v1786_v22 = vpop.eup %1785 }
 0x5c8   :  { %v1788_v59 = vpop.eup %1787 }
 0x5c9   :  { %1567 = vperm.xlu1 %1765, %v1786_v22   ;;  %1572 = vperm.xlu0 %1766, %v1788_v59  }
 0x5cd   :  { %1400 = vperm.xlu1 %1765, %v1397_v46   ;;  %1585 = vperm.xlu0 %1766, %v1397_v46  }
 0x5d1   :  { %1452 = vperm.xlu1 %1765, %v1449_v40   ;;  %1637 = vperm.xlu0 %1766, %v1449_v40  }
 0x5d5   :  { %1472 = vperm.xlu1 %1765, %v1469_v1   ;;  %1657 = vperm.xlu0 %1766, %v1654_v21  }
 0x643   :  { %v1383_v48 = vpop.permute.xlu0 %1382 }
 0x644   :  { %v2621_v38 = vmul.f32 %v1383_v48, %v2556_v62  ;;  %v2624_v3 = vmul.f32 %v1383_v48, %v2558_v53  ;;  %v1388_v57 = vpop.permute.xlu1 %1387 }
 0x645   :  { %v2627_v35 = vmul.f32 %v1388_v57, %v2560_v61  ;;  %v2630_v4 = vmul.f32 %v1388_v57, %v2564_v6 }
 0x647   :  { %v1395_v41 = vpack.c.bf16 %v2627_v35, %v2621_v38  ;;  %v1396_v29 = vpack.c.bf16 %v2630_v4, %v2624_v3 }
 0x648   :  { %v1573_v42 = vpop.permute.xlu0 %1572  ;;  %v1568_v12 = vpop.permute.xlu1 %1567 }
 0x649   :  { %v2637_v62 = vmul.f32 %v1573_v42, %v2566_v26  ;;  %v2640_v53 = vmul.f32 %v1573_v42, %v2568_v17  ;;  %v2643_v61 = vmul.f32 %v1568_v12, %v2570_v37  ;;  %v2646_v6 = vmul.f32 %v1568_v12, %v2572_v55  ;;  %1406 = vmatprep.subr.bf16.mxu0 %v1396_v29  ;;  %v1579_v17 = vld [vmem:[%s2716_s9] sm:$0xf] }
 0x64a   :  { %1407 = vmatpush1.bf16.msra.mxu0 %v1395_v41 }
 0x64b   :  { %v1580_v10 = vpack.c.bf16 %v2637_v62, %v2643_v61  ;;  %v1581_v26 = vpack.c.bf16 %v2640_v53, %v2646_v6 }
 0x64c   :  { %v1401_v37 = vpop.permute.xlu1 %1400  ;;  %v1586_v15 = vpop.permute.xlu0 %1585 }
 0x64d   :  { %1727 = vmatmul.mubr.msk.bf16.vlgmr.msra.gmra.mrb[8].mxu0 %vm249_vm10, %v1394_v47  ;;  %1591 = vmatprep.subr.bf16.mxu1 %v1581_v26 }
 0x64e   :  { %1592 = vmatpush1.bf16.msra.mxu1 %v1580_v10 }
 0x650   :  { %v1453_v9 = vpop.permute.xlu1 %1452  ;;  %v1638_v0 = vpop.permute.xlu0 %1637 }
 0x651   :  { %1728 = vmatmul.mubr.msk.bf16.vlgmr.msra.gmra.mrb[8].mxu1 %vm249_vm10, %v1579_v17 }
 0x654   :  { %v1473_v19 = vpop.permute.xlu1 %1472  ;;  %v1658_v21 = vpop.permute.xlu0 %1657 }
 0x655   :  { %v1478_v46 = vrot.slane %v1473_v19, %v2769_v14  ;;  %v1663_v47 = vrot.slane %v1658_v21, %v2769_v14  ;;  %v1730_v19 = vld [vmem:[%s2707_s0 + $0x28] sm:$0xff] }
 0x720   :  { %v1440_v55 = vpop.f32.mrb[8].mxu0 }
 0x721   :  { %v1441_v34 = vadd.f32 %v1440_v55, %v1401_v37  ;;  %v1442_v33 = vpop.f32.mrb[9].mxu0 }
 0x722   :  { %v1443_v50 = vadd.f32 %v1442_v33, %v1401_v37  ;;  %v1444_v27 = vpop.f32.mrb[10].mxu0 }
 0x723   :  { %v1447_v44 = vmax.f32 %v1441_v34, 0.0  ;;  %v1445_v58 = vpop.f32.mrb[11].mxu0 }
 0x724   :  { %v1448_v49 = vmax.f32 %v1443_v50, 0.0  ;;  %v1625_v16 = vpop.f32.mrb[8].mxu1 }
 0x725   :  { %v1455_v51 = vmul.f32 %v1453_v9, %v1447_v44  ;;  %v1626_v56 = vadd.f32 %v1625_v16, %v1586_v15  ;;  %v1627_v52 = vpop.f32.mrb[9].mxu1 }
 0x726   :  { %v1456_v2 = vmul.f32 %v1453_v9, %v1448_v49  ;;  %v1628_v11 = vadd.f32 %v1627_v52, %v1586_v15  ;;  %v1629_v31 = vpop.f32.mrb[10].mxu1 }
 0x727   :  { %v1457_v28 = vrot.slane %v1455_v51, 4  ;;  %v1632_v32 = vmax.f32 %v1626_v56, 0.0  ;;  %v1630_v5 = vpop.f32.mrb[11].mxu1  ;;  %v1495_v31 = vld [vmem:[%s2707_s0] sm:$0xff] }
 0x728   :  { %v1463_v13 = vrot.slane %v1456_v2, 4  ;;  %v1633_v20 = vmax.f32 %v1628_v11, 0.0 }
 0x729   :  { %v1458_v23 = vadd.f32 %v1457_v28, %v1455_v51  ;;  %v1640_v30 = vmul.f32 %v1638_v0, %v1632_v32  ;;  %v1497_v28 = vld [vmem:[%s2707_s0 + $0x10] sm:$0xff] }
 0x72a   :  { %v1464_v39 = vadd.f32 %v1463_v13, %v1456_v2  ;;  %v1641_v7 = vmul.f32 %v1638_v0, %v1633_v20  ;;  %v1496_v13 = vld [vmem:[%s2707_s0 + $0x8] sm:$0xff]  ;;  %v1498_v20 = vld [vmem:[%s2707_s0 + $0x18] sm:$0xff] }
 0x72b   :  { %v1459_v8 = vrot.slane %v1458_v23, 2  ;;  %v1642_v63 = vrot.slane %v1640_v30, 4 }
 0x72c   :  { %v1465_v60 = vrot.slane %v1464_v39, 2  ;;  %v1648_v45 = vrot.slane %v1641_v7, 4 }
 0x72d   :  { %v1460_v24 = vadd.f32 %v1459_v8, %v1458_v23  ;;  %v1643_v54 = vadd.f32 %v1642_v63, %v1640_v30 }
 0x72e   :  { %v1466_v36 = vadd.f32 %v1465_v60, %v1464_v39  ;;  %v1649_v43 = vadd.f32 %v1648_v45, %v1641_v7 }
 0x72f   :  { %v1461_v18 = vrot.slane %v1460_v24, 1  ;;  %v1644_v25 = vrot.slane %v1643_v54, 2 }
 0x730   :  { %v1467_v22 = vrot.slane %v1466_v36, 1  ;;  %v1650_v59 = vrot.slane %v1649_v43, 2 }
 0x731   :  { %v1462_v40 = vadd.f32 %v1461_v18, %v1460_v24  ;;  %v1645_v1 = vadd.f32 %v1644_v25, %v1643_v54 }
 0x732   :  { %v1468_v48 = vadd.f32 %v1467_v22, %v1466_v36  ;;  %v1651_v57 = vadd.f32 %v1650_v59, %v1649_v43  ;;  %v1732_v36 = vld [vmem:[%s2707_s0 + $0x38] sm:$0xff] }
 0x733   :  { %v1479_v41 = vadd.f32 %v1478_v46, %v1462_v40  ;;  %v1646_v29 = vrot.slane %v1645_v1, 1 }
 0x734   :  { %v1480_v42 = vadd.f32 %v1478_v46, %v1468_v48  ;;  %v1652_v12 = vrot.slane %v1651_v57, 1 }
 0x735   :  { %v1481_v10 = vsub.f32 0.0, %v1479_v41  ;;  %v1647_v26 = vadd.f32 %v1646_v29, %v1645_v1 }
 0x736   :  { %v1482_v17 = vsub.f32 0.0, %v1480_v42  ;;  %v1653_v37 = vadd.f32 %v1652_v12, %v1651_v57 }
 0x737   :  { %v1483_v55 = vmul.f32 1.442695, %v1481_v10  ;;  %v1664_v34 = vadd.f32 %v1663_v47, %v1647_v26 }
 0x738   :  { %v1485_v33 = vmul.f32 1.442695, %v1482_v17  ;;  %v1665_v15 = vadd.f32 %v1663_v47, %v1653_v37 }
 0x739   :  { %1789 = vpow2.f32 %v1483_v55  ;;  %v1666_v50 = vsub.f32 0.0, %v1664_v34 }
 0x73a   :  { %1791 = vpow2.f32 %v1485_v33  ;;  %v1667_v27 = vsub.f32 0.0, %v1665_v15 }
 0x73b   :  { %v1668_v44 = vmul.f32 1.442695, %v1666_v50 }
 0x73c   :  { %v1670_v58 = vmul.f32 1.442695, %v1667_v27 }
 0x73d   :  { %1793 = vpow2.f32 %v1668_v44 }
 0x73e   :  { %1795 = vpow2.f32 %v1670_v58 }
 0x743   :  { %v1790_v9 = vpop.eup %1789 }
 0x744   :  { %v1792_v49 = vpop.eup %1791  ;;  %v1487_v16 = vadd.f32 1.0, %v1790_v9 }
 0x745   :  { %v1488_v14 = vadd.f32 1.0, %v1792_v49 }
 0x746   :  { %1797 = vrcp.f32 %v1487_v16 }
 0x747   :  { %v1794_v51 = vpop.eup %1793  ;;  %1799 = vrcp.f32 %v1488_v14 }
 0x748   :  { %v1796_v56 = vpop.eup %1795  ;;  %v1672_v52 = vadd.f32 1.0, %v1794_v51 }
 0x749   :  { %v1673_v2 = vadd.f32 1.0, %v1796_v56 }
 0x74a   :  { %1801 = vrcp.f32 %v1672_v52 }
 0x74b   :  { %1803 = vrcp.f32 %v1673_v2 }
 0x750   :  { %v1798_v11 = vpop.eup %1797 }
 0x751   :  { %v1800_v32 = vpop.eup %1799  ;;  %v1491_v5 = vmul.f32 %v1798_v11, %v2621_v38  ;;  %v1493_v0 = vmul.f32 %v1798_v11, %v2627_v35  ;;  %v1729_v38 = vld [vmem:[%s2707_s0 + $0x20] sm:$0xff]  ;;  %v1731_v35 = vld [vmem:[%s2707_s0 + $0x30] sm:$0xff]  ;;  %s1805_s0 = scalar_lea.vmem %s1703_s6, 1024 }
 0x752   :  { %v1492_v23 = vmul.f32 %v1800_v32, %v2624_v3  ;;  %v1494_v30 = vmul.f32 %v1800_v32, %v2630_v4  ;;  %p1806_p0 = scmp.ne.s32.totalorder %s1703_s6, %s1805_s0  ;;  %p1811_p2 = scmp.lt.s32.totalorder %s1805_s0, %s1805_s0 }
 0x753   :  { %v1499_v39 = vadd.f32 %v1495_v31, %v1491_v5  ;;  %v1501_v7 = vadd.f32 %v1497_v28, %v1493_v0 }
 0x754   :  { %v1802_v8 = vpop.eup %1801  ;;  %v1500_v63 = vadd.f32 %v1496_v13, %v1492_v23  ;;  %v1502_v60 = vadd.f32 %v1498_v20, %v1494_v30  ;;  %p1812_p3 = por %p1811_p2, %p1810_p1 }
 0x755   :  { %v1804_v45 = vpop.eup %1803  ;;  %v1503_v24 = vmax.f32 %v1499_v39, 0.0  ;;  %v1505_v54 = vmax.f32 %v1501_v7, 0.0  ;;  %v1676_v3 = vmul.f32 %v1802_v8, %v2643_v61  ;;  %v1678_v4 = vmul.f32 %v1802_v8, %v2637_v62 }
 0x756   :  { %v1504_v43 = vmax.f32 %v1500_v63, 0.0  ;;  %v1506_v18 = vmax.f32 %v1502_v60, 0.0  ;;  %v1677_v25 = vmul.f32 %v1804_v45, %v2646_v6  ;;  %v1679_v22 = vmul.f32 %v1804_v45, %v2640_v53  ;;  %p1813_p4 = pnand %p1812_p3, %p1806_p0 }
 0x757   :  { %1507 = vst [vmem:[#allocation5] sm:$0xff] %v1503_v24  ;;  %1509 = vst [vmem:[#allocation5 + $0x10] sm:$0xff] %v1505_v54  ;;  %v1684_v59 = vadd.f32 %v1729_v38, %v1676_v3  ;;  %v1686_v61 = vadd.f32 %v1731_v35, %v1678_v4 }
 0x758   :  { %1508 = vst [vmem:[#allocation5 + $0x8] sm:$0xff] %v1504_v43  ;;  %1510 = vst [vmem:[#allocation5 + $0x18] sm:$0xff] %v1506_v18  ;;  %v1685_v62 = vadd.f32 %v1730_v19, %v1677_v25  ;;  %v1687_v46 = vadd.f32 %v1732_v36, %v1679_v22 }
 0x759   :  { %v1688_v40 = vmax.f32 %v1684_v59, 0.0  ;;  %v1690_v1 = vmax.f32 %v1686_v61, 0.0 }
 0x75a   :  { %v1689_v21 = vmax.f32 %v1685_v62, 0.0  ;;  %v1691_v48 = vmax.f32 %v1687_v46, 0.0 }
 0x75b   :  { %1693 = vst [vmem:[#allocation5 + $0x20] sm:$0xff] %v1688_v40  ;;  %1695 = vst [vmem:[#allocation5 + $0x30] sm:$0xff] %v1690_v1 }
 0x75c   :  { %1694 = vst [vmem:[#allocation5 + $0x28] sm:$0xff] %v1689_v21  ;;  %1696 = vst [vmem:[#allocation5 + $0x38] sm:$0xff] %v1691_v48 }
 0x75d   :  { %1816 = shalt.err (!%p1813_p4)
}
 0x75e   :  { %s1817_s25 = scalar_lea.hbm %s2722_s15, 1024 }
 0x75f   :  { %p1818_p5 = scmp.ne.s32.totalorder %s2722_s15, %s1817_s25  ;;  %p1821_p6 = scmp.lt.u32.totalorder %s1817_s25, %s2722_s15 }
 0x761   :  { %p1823_p7 = pnand %p1821_p6, %p1818_p5 }
 0x763   :  { %1826 = shalt.err (!%p1823_p7)
}
 0x764   :  { %s1860_s10 = smov 256   ;;  %s2770_s11 = smov 16  }
 0x765   :  { %1708 = dma.vmem_to_hbm [thread:$0]  %s1703_s6, 1024, %s2722_s15, [#allocation6], %s1860_s10, %s1860_s10, %s2770_s11  }
 0x766   :  { %1827 = dma.done.wait [#allocation6], 1024  }
 0x767   :  { %1828 = vsyncadd [#allocation6], 4294966272 }
 0x768   :  { %1712 = vsyncpa [#allocation6], 1 }

</bundles_post_ra>
